<compile_context>
chip_gen: v7x
topology: tpu7x:2x2x1
jax: 0.10.0
libtpu: 0.0.40
codegen_flags: <defaults>
</compile_context>

<pallas_src>
import functools
import jax
import jax.numpy as jnp
from jax.experimental import pallas as pl
from jax.experimental.pallas import tpu as pltpu

OUT_DIM = 256


def _vmem_limit_bytes():
    # Derive a safe scoped-VMEM limit per generation (v7x has only 64 MiB/TC).
    cap = 64 * 1024 * 1024
    try:
        info = pltpu.get_tpu_info()
        cap = int(getattr(info, "vmem_capacity_bytes", cap))
    except Exception:
        pass
    return int(min(cap * 3 // 4, 96 * 1024 * 1024))


_VMEM_LIMIT = _vmem_limit_bytes()


def _pick_tile(n, cap=1024):
    """Largest row tile <= cap that evenly divides n (multiple of 8), else n."""
    if n <= cap:
        return n
    t = cap - cap % 8
    while t >= 8:
        if n % t == 0:
            return t
        t -= 8
    return n


# ----------------------------------------------------------------------------
# Pallas kernels
# ----------------------------------------------------------------------------
def _matmul_stats_kernel(a_ref, b_ref, o_ref, s_ref, ss_ref):
    # bf16 x bf16 -> f32 MXU matmul; BN column sum / sum-of-squares fused into
    # the epilogue so no separate stats pass has to re-read the output.
    acc = jnp.dot(a_ref[...], b_ref[...], preferred_element_type=jnp.float32)
    o_ref[...] = acc.astype(o_ref.dtype)
    s_ref[...] = jnp.sum(acc, axis=0, keepdims=True)[None]
    ss_ref[...] = jnp.sum(acc * acc, axis=0, keepdims=True)[None]


def matmul_stats(a, b):
    """(M, K) @ (K, N) -> bf16 (M, N) plus per-column sum / sum-sq (1, N) f32."""
    M, K = a.shape
    K2, N = b.shape
    assert K == K2
    tm = _pick_tile(M, 1024)
    tn = N
    if M // tm == 1 and N >= 256:
        tn = N // 2            # keep >= 2 parallel blocks for v7x dual TensorCores
    mt, nt = M // tm, N // tn
    cost = pl.CostEstimate(flops=2 * M * N * K, transcendentals=0,
                           bytes_accessed=int(a.size * 2 + b.size * 2 + M * N * 2))
    out, s, ss = pl.pallas_call(
        _matmul_stats_kernel,
        out_shape=(jax.ShapeDtypeStruct((M, N), jnp.bfloat16),
                   jax.ShapeDtypeStruct((mt, 1, N), jnp.float32),
                   jax.ShapeDtypeStruct((mt, 1, N), jnp.float32)),
        grid_spec=pltpu.PrefetchScalarGridSpec(
            num_scalar_prefetch=0,
            grid=(mt, nt),
            in_specs=[pl.BlockSpec((tm, K), lambda i, j: (i, 0)),
                      pl.BlockSpec((K, tn), lambda i, j: (0, j))],
            out_specs=(pl.BlockSpec((tm, tn), lambda i, j: (i, j)),
                       pl.BlockSpec((1, 1, tn), lambda i, j: (i, 0, j)),
                       pl.BlockSpec((1, 1, tn), lambda i, j: (i, 0, j)))),
        compiler_params=pltpu.CompilerParams(
            dimension_semantics=("parallel", "parallel"),
            vmem_limit_bytes=_VMEM_LIMIT),
        cost_estimate=cost,
    )(a, b)
    return out, s.sum(axis=0), ss.sum(axis=0)


def _conv3x3_kernel(x_ref, w_ref, m_ref, o_ref, s_ref, ss_ref, *, taps, lo):
    # Direct 3x3/stride-1 conv on one image: the patch matrix is built from
    # nine shifted views of the padded row-flat activation *in VMEM only*,
    # followed by one full-K MXU matmul.  The junk (padding) columns of the
    # wide output layout are zeroed and BN partial statistics are emitted.
    pieces = [x_ref[0, t:t + lo, :] for t in taps]
    patches = jnp.concatenate(pieces, axis=-1)           # (lo, 9*Cin) bf16
    acc = jnp.dot(patches, w_ref[...], preferred_element_type=jnp.float32)
    acc = acc * m_ref[...]                               # zero junk columns
    o_ref[0] = acc.astype(o_ref.dtype)
    s_ref[...] = jnp.sum(acc, axis=0, keepdims=True)[None]
    ss_ref[...] = jnp.sum(acc * acc, axis=0, keepdims=True)[None]


def conv3x3_direct(x_padflat, w, H, W):
    """x_padflat: (B, (H+3)*(W+2), Cin) bf16 padded row-flat activation;
    w: (9*Cin, Cout) bf16.  Returns the conv output in the row-flat 'wide'
    layout (B, H*(W+2), Cout) bf16 (junk cols zeroed) plus BN sum / sum-sq."""
    B, lin, cin = x_padflat.shape
    wp = W + 2
    lo = H * wp
    assert lin == (H + 3) * wp
    cout = w.shape[1]
    taps = tuple(di * wp + dj for di in range(3) for dj in range(3))
    mask = (jnp.arange(lo) % wp < W).astype(jnp.float32).reshape(lo, 1)
    kernel = functools.partial(_conv3x3_kernel, taps=taps, lo=lo)
    cost = pl.CostEstimate(flops=2 * B * lo * 9 * cin * cout, transcendentals=0,
                           bytes_accessed=int(x_padflat.size * 2 + w.size * 2
                                              + B * lo * cout * 2))
    out, s, ss = pl.pallas_call(
        kernel,
        out_shape=(jax.ShapeDtypeStruct((B, lo, cout), jnp.bfloat16),
                   jax.ShapeDtypeStruct((B, 1, cout), jnp.float32),
                   jax.ShapeDtypeStruct((B, 1, cout), jnp.float32)),
        grid_spec=pltpu.PrefetchScalarGridSpec(
            num_scalar_prefetch=0,
            grid=(B,),
            in_specs=[pl.BlockSpec((1, lin, cin), lambda b: (b, 0, 0)),
                      pl.BlockSpec((9 * cin, cout), lambda b: (0, 0)),
                      pl.BlockSpec((lo, 1), lambda b: (0, 0))],
            out_specs=(pl.BlockSpec((1, lo, cout), lambda b: (b, 0, 0)),
                       pl.BlockSpec((1, 1, cout), lambda b: (b, 0, 0)),
                       pl.BlockSpec((1, 1, cout), lambda b: (b, 0, 0)))),
        compiler_params=pltpu.CompilerParams(
            dimension_semantics=("parallel",),
            vmem_limit_bytes=_VMEM_LIMIT),
        cost_estimate=cost,
    )(x_padflat, w, mask)
    return out, s.sum(axis=0), ss.sum(axis=0)


def _bn_apply_kernel(*refs, relu, has_res, has_mask):
    i = 0
    x_ref = refs[i]; i += 1
    sc_ref = refs[i]; i += 1
    sh_ref = refs[i]; i += 1
    r_ref = m_ref = None
    if has_res:
        r_ref = refs[i]; i += 1
    if has_mask:
        m_ref = refs[i]; i += 1
    o_ref = refs[i]
    y = x_ref[...].astype(jnp.float32) * sc_ref[...] + sh_ref[...]
    if has_res:
        y = y + r_ref[...].astype(jnp.float32)
    if relu:
        y = jnp.maximum(y, 0.0)
    if has_mask:
        y = y * m_ref[...]          # keep wide-layout junk columns exactly zero
    o_ref[...] = y.astype(o_ref.dtype)


def bn_act(x, s, ss, count, gamma, beta, relu, residual=None, wide=None):
    """Training-mode BatchNorm (+residual)(+ReLU) on a (M, C) bf16 tensor given
    pre-computed per-channel sums.  wide=(Wp, W): rows are in the padded wide
    layout and the junk columns are zeroed.  C=64 tensors use a lane-dense
    (M/2, 128) view."""
    M, C = x.shape
    mean = s / count
    var = jnp.maximum(ss / count - mean * mean, 0.0)    # biased batch variance
    scale = gamma.reshape(1, C) * jax.lax.rsqrt(var + 1e-5)
    shift = beta.reshape(1, C) - mean * scale

    x2, r2, sc2, sh2, cl = x, residual, scale, shift, C
    wp, wv = (wide if wide is not None else (None, None))
    merge = (C == 64 and M % 2 == 0
             and (wide is None or (wp % 2 == 0 and wv % 2 == 0)))
    if merge:
        cl = 128
        x2 = x.reshape(M // 2, cl)
        if residual is not None:
            r2 = residual.reshape(M // 2, cl)
        sc2 = jnp.concatenate([scale, scale], axis=1)
        sh2 = jnp.concatenate([shift, shift], axis=1)
        if wide is not None:
            wp, wv = wp // 2, wv // 2
    R = x2.shape[0]
    tm = _pick_tile(R, 1024)

    args = [x2, sc2, sh2]
    in_specs = [pl.BlockSpec((tm, cl), lambda i: (i, 0)),
                pl.BlockSpec((1, cl), lambda i: (0, 0)),
                pl.BlockSpec((1, cl), lambda i: (0, 0))]
    if residual is not None:
        args.append(r2)
        in_specs.append(pl.BlockSpec((tm, cl), lambda i: (i, 0)))
    if wide is not None:
        mask = (jnp.arange(R) % wp < wv).astype(jnp.float32).reshape(R, 1)
        args.append(mask)
        in_specs.append(pl.BlockSpec((tm, 1), lambda i: (i, 0)))
    kernel = functools.partial(_bn_apply_kernel, relu=relu,
                               has_res=residual is not None,
                               has_mask=wide is not None)
    out = pl.pallas_call(
        kernel,
        out_shape=jax.ShapeDtypeStruct((R, cl), jnp.bfloat16),
        grid_spec=pltpu.PrefetchScalarGridSpec(
            num_scalar_prefetch=0,
            grid=(R // tm,),
            in_specs=in_specs,
            out_specs=pl.BlockSpec((tm, cl), lambda i: (i, 0))),
        compiler_params=pltpu.CompilerParams(
            dimension_semantics=("parallel",),
            vmem_limit_bytes=_VMEM_LIMIT),
    )(*args)
    return out.reshape(M, C)


def _max9_kernel(x_ref, o_ref):
    o_ref[...] = jnp.max(x_ref[...], axis=0)


def maxpool_3x3_s2(x_nhwc):
    """3x3 / stride-2 / pad-1 max pool (input is post-ReLU, so zero padding is
    exact).  Runs on a lane-dense (M/2, 128) view of the 64-channel stem.
    # TODO(synk): the nine shifted slices are still materialized by XLA in bf16;
    # an in-kernel shifted-window pool would cut this op's HBM traffic further."""
    B, H, W, C = x_nhwc.shape
    xp = jnp.pad(x_nhwc, ((0, 0), (1, 1), (1, 1), (0, 0)))
    oh = (H + 2 - 3) // 2 + 1
    ow = (W + 2 - 3) // 2 + 1
    slices = [xp[:, i:i + (oh - 1) * 2 + 1:2, j:j + (ow - 1) * 2 + 1:2, :]
              for i in range(3) for j in range(3)]
    mo = B * oh * ow
    stacked = jnp.stack(slices, axis=0).reshape(9, mo, C)
    r, cl = mo, C
    if C == 64 and mo % 2 == 0:
        r, cl = mo // 2, 128
        stacked = stacked.reshape(9, r, cl)
    tm = _pick_tile(r, 1024)
    out = pl.pallas_call(
        _max9_kernel,
        out_shape=jax.ShapeDtypeStruct((r, cl), jnp.bfloat16),
        grid_spec=pltpu.PrefetchScalarGridSpec(
            num_scalar_prefetch=0,
            grid=(r // tm,),
            in_specs=[pl.BlockSpec((9, tm, cl), lambda i: (0, i, 0))],
            out_specs=pl.BlockSpec((tm, cl), lambda i: (i, 0))),
        compiler_params=pltpu.CompilerParams(
            dimension_semantics=("parallel",),
            vmem_limit_bytes=_VMEM_LIMIT),
    )(stacked)
    return out.reshape(B, oh, ow, C)


def _head_kernel(x_ref, w1_ref, b1_ref, w2_ref, b2_ref, o_ref, *, inv_count):
    # GAP (junk columns of the wide layout are exact zeros, so a plain sum
    # divided by the true count is correct) + Linear/ReLU/Linear.
    feat = jnp.sum(x_ref[...].astype(jnp.float32), axis=1) * inv_count
    h = jnp.dot(feat.astype(jnp.bfloat16), w1_ref[...],
                preferred_element_type=jnp.float32) + b1_ref[...]
    h = jnp.maximum(h, 0.0)
    o_ref[...] = jnp.dot(h.astype(jnp.bfloat16), w2_ref[...],
                         preferred_element_type=jnp.float32) + b2_ref[...]


# ----------------------------------------------------------------------------
# JAX glue (layout plumbing only)
# ----------------------------------------------------------------------------
def nearest_resize(x, out_h, out_w):
    # PyTorch F.interpolate(mode='nearest'): idx = floor(out_idx * in/out)
    B, H, W, C = x.shape
    rows = jnp.floor(jnp.arange(out_h) * (H / out_h)).astype(jnp.int32)
    cols = jnp.floor(jnp.arange(out_w) * (W / out_w)).astype(jnp.int32)
    return x[:, rows][:, :, cols]


def im2col(x, k, stride, pad):
    """bf16 patch matrix; only used for the stem 7x7/s2 and the 3x3/s2 convs."""
    if pad:
        x = jnp.pad(x, ((0, 0), (pad, pad), (pad, pad), (0, 0)))
    B, H, W, C = x.shape
    oh = (H - k) // stride + 1
    ow = (W - k) // stride + 1
    cols = [x[:, i:i + (oh - 1) * stride + 1:stride,
              j:j + (ow - 1) * stride + 1:stride, :]
            for i in range(k) for j in range(k)]
    patches = jnp.concatenate(cols, axis=-1)
    return patches.reshape(B * oh * ow, k * k * C), oh, ow


def to_wide(x_nhwc):
    """(B, H, W, C) -> row-flat 'wide' layout (B, H*(W+2), C), junk cols zero."""
    B, H, W, C = x_nhwc.shape
    return jnp.pad(x_nhwc, ((0, 0), (0, 0), (0, 2), (0, 0))).reshape(B, H * (W + 2), C)


def wide_to_nhwc(xw, H, W):
    B, _, C = xw.shape
    return xw.reshape(B, H, W + 2, C)[:, :, :W, :]


def pad_wide_for_conv(xw, W):
    """'wide' activation -> padded row-flat input of a 3x3/s1 conv (one pad op)."""
    wp = W + 2
    return jnp.pad(xw, ((0, 0), (wp + 1, 2 * wp - 1), (0, 0)))


def pad_nhwc_for_conv(x_nhwc):
    """Standard NHWC activation -> padded row-flat input of a 3x3/s1 conv."""
    B, H, W, C = x_nhwc.shape
    xp = jnp.pad(x_nhwc, ((0, 0), (1, 2), (1, 1), (0, 0)))
    return xp.reshape(B, (H + 3) * (W + 2), C)


# ----------------------------------------------------------------------------
# Parameters (deterministic synthetic init — shapes follow torchvision resnet18)
# ----------------------------------------------------------------------------
def _conv_w(key, k, cin, cout):
    fan_in = k * k * cin
    w = jax.random.normal(key, (fan_in, cout), jnp.float32) / float(fan_in) ** 0.5
    return w.astype(jnp.bfloat16)      # bf16 weights, no contraction-dim padding


def init_params(key, out_dim=OUT_DIM):
    it = iter(jax.random.split(key, 64))
    p = {
        "conv1_w": _conv_w(next(it), 7, 3, 64),
        "bn1_g": jnp.ones((64,), jnp.float32),
        "bn1_b": jnp.zeros((64,), jnp.float32),
    }
    layers = []
    cin = 64
    for cout, stride in [(64, 1), (128, 2), (256, 2), (512, 2)]:
        blocks = []
        for b in range(2):
            s = stride if b == 0 else 1
            bp = {
                "stride": s,
                "conv1_w": _conv_w(next(it), 3, cin, cout),
                "bn1_g": jnp.ones((cout,), jnp.float32),
                "bn1_b": jnp.zeros((cout,), jnp.float32),
                "conv2_w": _conv_w(next(it), 3, cout, cout),
                "bn2_g": jnp.ones((cout,), jnp.float32),
                "bn2_b": jnp.zeros((cout,), jnp.float32),
            }
            if s != 1 or cin != cout:
                bp["down_w"] = _conv_w(next(it), 1, cin, cout)
                bp["down_g"] = jnp.ones((cout,), jnp.float32)
                bp["down_b"] = jnp.zeros((cout,), jnp.float32)
            blocks.append(bp)
            cin = cout
        layers.append(blocks)
    p["layers"] = layers
    p["fc1_w"] = (jax.random.normal(next(it), (512, 256), jnp.float32)
                  / 512.0 ** 0.5).astype(jnp.bfloat16)
    p["fc1_b"] = jnp.zeros((256,), jnp.float32)
    p["fc2_w"] = (jax.random.normal(next(it), (256, out_dim), jnp.float32)
                  / 256.0 ** 0.5).astype(jnp.bfloat16)
    p["fc2_b"] = jnp.zeros((out_dim,), jnp.float32)
    return p


# ----------------------------------------------------------------------------
# Forward pass
# ----------------------------------------------------------------------------
def basic_block(yw, B, H, W, cin, bp):
    s = bp["stride"]
    cout = bp["bn1_g"].shape[0]

    if s == 1:
        # conv1 (3x3/s1, direct in-VMEM) -> BN -> ReLU
        o1, s1, ss1 = conv3x3_direct(pad_wide_for_conv(yw, W), bp["conv1_w"], H, W)
        H2, W2 = H, W
        a1 = bn_act(o1.reshape(B * H2 * (W2 + 2), cout), s1, ss1, B * H2 * W2,
                    bp["bn1_g"], bp["bn1_b"], relu=True, wide=(W2 + 2, W2))
        xin2 = pad_wide_for_conv(a1.reshape(B, H2 * (W2 + 2), cout), W2)
        idn_wide = yw                                   # identity shortcut
    else:
        # conv1 (3x3/s2) keeps the (small) im2col path -> BN -> ReLU
        x_std = wide_to_nhwc(yw, H, W)
        patches, H2, W2 = im2col(x_std, 3, 2, 1)
        o1, s1, ss1 = matmul_stats(patches, bp["conv1_w"])
        a1 = bn_act(o1, s1, ss1, B * H2 * W2, bp["bn1_g"], bp["bn1_b"], relu=True)
        xin2 = pad_nhwc_for_conv(a1.reshape(B, H2, W2, cout))
        # 1x1/s2 downsample shortcut: subsample + matmul + BN
        xs = x_std[:, ::2, ::2, :].reshape(B * H2 * W2, cin)
        od, sd, ssd = matmul_stats(xs, bp["down_w"])
        idn = bn_act(od, sd, ssd, B * H2 * W2, bp["down_g"], bp["down_b"], relu=False)
        idn_wide = to_wide(idn.reshape(B, H2, W2, cout))

    # conv2 (3x3/s1, direct) -> BN + residual + ReLU
    o2, s2, ss2 = conv3x3_direct(xin2, bp["conv2_w"], H2, W2)
    out = bn_act(o2.reshape(B * H2 * (W2 + 2), cout), s2, ss2, B * H2 * W2,
                 bp["bn2_g"], bp["bn2_b"], relu=True,
                 residual=idn_wide.reshape(B * H2 * (W2 + 2), cout),
                 wide=(W2 + 2, W2))
    return out.reshape(B, H2 * (W2 + 2), cout), H2, W2


def pretrained_resnet_encoder_forward(x_nchw, params):
    """x_nchw: (B, 3, H, W) float pixel values in [0, 255]. Returns (B, out_dim)."""
    B = x_nchw.shape[0]
    x = x_nchw.astype(jnp.float32) / 255.0
    x = jnp.transpose(x, (0, 2, 3, 1))                  # NCHW -> NHWC
    x = nearest_resize(x, 224, 224).astype(jnp.bfloat16)

    # stem: conv7x7/s2 -> BN -> ReLU -> maxpool3x3/s2
    patches, oh, ow = im2col(x, 7, 2, 3)
    o, s, ss = matmul_stats(patches, params["conv1_w"])
    a = bn_act(o, s, ss, B * oh * ow, params["bn1_g"], params["bn1_b"], relu=True)
    y_nhwc = maxpool_3x3_s2(a.reshape(B, oh, ow, 64))
    H, W = y_nhwc.shape[1], y_nhwc.shape[2]
    yw = to_wide(y_nhwc)                                # switch to 'wide' layout

    cin = 64
    for stage in params["layers"]:
        for bp in stage:
            yw, H, W = basic_block(yw, B, H, W, cin, bp)
            cin = bp["bn1_g"].shape[0]

    # global avg pool + Flatten + Linear(512,256) + ReLU + Linear(256,out_dim)
    lo = H * (W + 2)
    kernel = functools.partial(_head_kernel, inv_count=1.0 / float(H * W))
    out = pl.pallas_call(
        kernel,
        out_shape=jax.ShapeDtypeStruct((B, params["fc2_w"].shape[1]), jnp.float32),
        in_specs=[pl.BlockSpec(memory_space=pltpu.MemorySpace.VMEM)] * 5,
        out_specs=pl.BlockSpec(memory_space=pltpu.MemorySpace.VMEM),
        compiler_params=pltpu.CompilerParams(vmem_limit_bytes=_VMEM_LIMIT),
    )(yw.reshape(B, lo, cin),
      params["fc1_w"], params["fc1_b"].reshape(1, -1),
      params["fc2_w"], params["fc2_b"].reshape(1, -1))
    return out


# ----------------------------------------------------------------------------
if __name__ == "__main__":
    key = jax.random.PRNGKey(0)
    k_param, k_data = jax.random.split(key)
    params = init_params(k_param, out_dim=OUT_DIM)

    # small "image" batch, pixel values in [0, 255]; forward upsamples to 224x224
    x = jax.random.uniform(k_data, (2, 3, 16, 16), jnp.float32) * 255.0

    out = pretrained_resnet_encoder_forward(x, params)
    out = jax.block_until_ready(out)
    assert out.shape == (2, OUT_DIM), out.shape
    assert bool(jnp.all(jnp.isfinite(out)))
    print("KERNEL_OK")
</pallas_src>

<mosaic_0001>
module attributes {stable_mosaic.version = 11 : i64} {
  func.func @_matmul_stats_kernel(%arg0: i32, %arg1: i32, %arg2: memref<896x147xbf16, #tpu.memory_space<vmem>>, %arg3: memref<147x64xbf16, #tpu.memory_space<vmem>>, %arg4: memref<896x64xbf16, #tpu.memory_space<vmem>>, %arg5: memref<1x1x64xf32, #tpu.memory_space<vmem>>, %arg6: memref<1x1x64xf32, #tpu.memory_space<vmem>>) attributes {dimension_semantics = [#tpu.dimension_semantics<parallel>, #tpu.dimension_semantics<parallel>], iteration_bounds = array<i64: 28, 1>, scalar_prefetch = 0 : i64, scratch_operands = 0 : i64, tpu.core_type = #tpu.core_type<tc>, window_params = [{transform_indices = @transform_0, window_bounds = array<i64: 896, 147>}, {transform_indices = @transform_1, window_bounds = array<i64: 147, 64>}, {transform_indices = @transform_2, window_bounds = array<i64: 896, 64>}, {transform_indices = @transform_3, window_bounds = array<i64: 1, 1, 64>}, {transform_indices = @transform_4, window_bounds = array<i64: 1, 1, 64>}]} {
    %c0 = arith.constant 0 : index
    %c0_0 = arith.constant 0 : index
    %0 = vector.load %arg2[%c0, %c0_0] : memref<896x147xbf16, #tpu.memory_space<vmem>>, vector<896x147xbf16>
    %c0_1 = arith.constant 0 : index
    %c0_2 = arith.constant 0 : index
    %1 = vector.load %arg3[%c0_1, %c0_2] : memref<147x64xbf16, #tpu.memory_space<vmem>>, vector<147x64xbf16>
    %cst = arith.constant dense<0.000000e+00> : vector<896x64xf32>
    %2 = tpu.matmul %0, %1, %cst {dimension_numbers = #tpu.dot_dimension_numbers<[1], [0], [0], [1], [0, 0, 1, 1], [], []>} : vector<896x147xbf16>, vector<147x64xbf16>, vector<896x64xf32> -> vector<896x64xf32>
    %3 = arith.truncf %2 : vector<896x64xf32> to vector<896x64xbf16>
    %c0_3 = arith.constant 0 : index
    %c0_4 = arith.constant 0 : index
    %4 = vector.load %arg4[%c0_3, %c0_4] : memref<896x64xbf16, #tpu.memory_space<vmem>>, vector<896x64xbf16>
    tpu.vector_store %arg4[%c0_3, %c0_4], %3 {strides = array<i32>} : memref<896x64xbf16, #tpu.memory_space<vmem>>, vector<896x64xbf16>,
    %cst_5 = arith.constant dense<0.000000e+00> : vector<64xf32>
    %5 = vector.multi_reduction <add>, %2, %cst_5 [0] : vector<896x64xf32> to vector<64xf32>
    %6 = vector.shape_cast %5 : vector<64xf32> to vector<1x64xf32>
    %7 = vector.shape_cast %6 : vector<1x64xf32> to vector<1x1x64xf32>
    %c0_6 = arith.constant 0 : index
    %c0_7 = arith.constant 0 : index
    %c0_8 = arith.constant 0 : index
    %8 = vector.load %arg5[%c0_6, %c0_7, %c0_8] : memref<1x1x64xf32, #tpu.memory_space<vmem>>, vector<1x1x64xf32>
    tpu.vector_store %arg5[%c0_6, %c0_7, %c0_8], %7 {strides = array<i32>} : memref<1x1x64xf32, #tpu.memory_space<vmem>>, vector<1x1x64xf32>,
    %9 = arith.mulf %2, %2 : vector<896x64xf32>
    %cst_9 = arith.constant dense<0.000000e+00> : vector<64xf32>
    %10 = vector.multi_reduction <add>, %9, %cst_9 [0] : vector<896x64xf32> to vector<64xf32>
    %11 = vector.shape_cast %10 : vector<64xf32> to vector<1x64xf32>
    %12 = vector.shape_cast %11 : vector<1x64xf32> to vector<1x1x64xf32>
    %c0_10 = arith.constant 0 : index
    %c0_11 = arith.constant 0 : index
    %c0_12 = arith.constant 0 : index
    %13 = vector.load %arg6[%c0_10, %c0_11, %c0_12] : memref<1x1x64xf32, #tpu.memory_space<vmem>>, vector<1x1x64xf32>
    tpu.vector_store %arg6[%c0_10, %c0_11, %c0_12], %12 {strides = array<i32>} : memref<1x1x64xf32, #tpu.memory_space<vmem>>, vector<1x1x64xf32>,
    return
  }
  func.func @transform_0(%arg0: i32, %arg1: i32) -> (i32, i32) {
    %c0_i32 = arith.constant 0 : i32
    %c0_i32_0 = arith.constant 0 : i32
    return %arg0, %c0_i32 : i32, i32
  }
  func.func @transform_1(%arg0: i32, %arg1: i32) -> (i32, i32) {
    %c0_i32 = arith.constant 0 : i32
    %c0_i32_0 = arith.constant 0 : i32
    return %c0_i32, %arg1 : i32, i32
  }
  func.func @transform_2(%arg0: i32, %arg1: i32) -> (i32, i32) {
    %c0_i32 = arith.constant 0 : i32
    return %arg0, %arg1 : i32, i32
  }
  func.func @transform_3(%arg0: i32, %arg1: i32) -> (i32, i32, i32) {
    %c0_i32 = arith.constant 0 : i32
    %c0_i32_0 = arith.constant 0 : i32
    return %arg0, %c0_i32, %arg1 : i32, i32, i32
  }
  func.func @transform_4(%arg0: i32, %arg1: i32) -> (i32, i32, i32) {
    %c0_i32 = arith.constant 0 : i32
    %c0_i32_0 = arith.constant 0 : i32
    return %arg0, %c0_i32, %arg1 : i32, i32, i32
  }
}

</mosaic_0001>

<bundles_post_ra>
// kernel: tpu_custom_call.1
= control target key start
LH: loop header
LB: loop body
LE: loop exit
PB: predicated region body
PF: predicated region fallthrough
CT: control target
= control target key end

     0   :  { %10 = vsyncpa [#allocation3], 0  ;;  %s5028_s0 = inlined_call_operand.vmem [shape: bf16[25088,147], index: 0, kind: input, shape index: {}]   ;;  %s5029_s1 = inlined_call_operand.vmem [shape: bf16[147,64], index: 1, kind: input, shape index: {}]   ;;  %s5030_s2 = inlined_call_operand.hbm [shape: bf16[25088,64], index: 2, kind: output, shape index: {0}]   ;;  %s5031_s3 = inlined_call_operand.hbm [shape: f32[28,1,64], index: 3, kind: output, shape index: {1}]   ;;  %s5032_s4 = inlined_call_operand.hbm [shape: f32[28,1,64], index: 4, kind: output, shape index: {2}]  }
   0x1   :  { %12 = vsyncpa [#allocation3 + $0x1], 0 }
   0x2   :  { %13 = vsyncpa [#allocation5], 0 }
   0x3   :  { %15 = vsyncpa [#allocation5 + $0x1], 0  ;;  %s3773_s15 = smov 0   ;;  %s3775_s16 = smov 0  }
   0x4   :  { %s3777_s17 = smov 0   ;;  %s3779_s18 = smov 0  }
   0x5   :  { %s3781_s19 = smov 0   ;;  %s3783_s20 = smov 0  }
   0x6 LB: > { %s2931_s21 = sadd.s32 4294967295, %s3739_s20   ;;  %s2932_s22 = sadd.s32 4294967294, %s3739_s20   ;;  %s3739_s20 = sphi %s3783_s20, %s21_s20   ;;  %s3735_s19 = sphi %s3781_s19, %s5075_s19   ;;  %s3731_s18 = sphi %s3779_s18, %s5074_s18   ;;  %s3727_s17 = sphi %s3777_s17, %s5073_s17   ;;  %s3723_s16 = sphi %s3775_s16, %s5072_s16   ;;  %s3719_s15 = sphi %s3773_s15, %s5071_s15  }
   0x7   : > { %s33_s23 = sadd.s32 1, %s3735_s19  ;;  %s94_s24 = sadd.s32 1, %s3727_s17 }
   0x8   : > { %p35_p0 = scmp.ge.s32.totalorder %s33_s23, 28  ;;  %p104_p1 = scmp.ne.s32.totalorder %s3727_s17, %s3723_s16 }
   0x9   : > { %p105_p2 = scmp.eq.s32.totalorder %s2931_s21, 27  ;;  %p110_p3 = scmp.ne.s32.totalorder %s3723_s16, %s3719_s15 }
   0xa   : > { %s5077_s23 = smov (%p35_p0, %s33_s23), 0  ;;  %p111_p5 = scmp.eq.s32.totalorder %s2932_s22, 27 }
   0xb   : > { %p3815_p4 = por %p105_p2, %p104_p1  ;;  %s89_s26 = ssub.s32 %s3735_s19, %s5077_s23 }
   0xc   : > { %p2936_p6 = scmp.ge.s32.totalorder %s3739_s20, 1  ;;  %p92_p7 = scmp.eq.s32.totalorder %s89_s26, 0 }
   0xd   : > { %p3824_p8 = por %p111_p5, %p110_p3  ;;  %p202_p9 = scmp.lt.s32.totalorder %s3739_s20, 29 }
   0xe   : > { %s3830_s28 = scalar_select %p92_p7, %s3727_s17, %s94_s24  }
   0xf   : > { %p203_p10 = pnand %p2936_p6, %p202_p9 }
  0x11   : > { %206 = sbr.rel (%p203_p10) target bundleno = 669 (0x29d), region = 28 }
  0x18   : > { %v3438_v0 = vld [vmem:[%s5029_s1] sm:$0xff]   ;;  %v3741_v1 = vmov 0   ;;  %v3439_v2 = vld [vmem:[%s5029_s1 + $0x8] sm:$0xff]   ;;  %v3440_v3 = vld [vmem:[%s5029_s1 + $0x10] sm:$0xff]   ;;  %s241_s9 = smul.u32 112, %s3731_s18  ;;  %vm946_vm0 = vcmask 154624  }
  0x19   : > { %1122 = vmatprep.subr.bf16.mxu0 %v3741_v1  ;;  %3348 = vmatprep.subr.bf16.mxu1 %v3741_v1  ;;  %v3441_v4 = vld [vmem:[%s5029_s1 + $0x18] sm:$0xff]   ;;  %v3442_v5 = vld [vmem:[%s5029_s1 + $0x20] sm:$0xff]   ;;  %v3443_v7 = vld [vmem:[%s5029_s1 + $0x28] sm:$0xff]   ;;  %vm1115_vm1 = vcmask 1040384   ;;  %vm1116_vm2 = vcmask 1041408   ;;  %v3742_v10 = vmov 65535  }
  0x1a   : > { %1123 = vmatpush1.bf16.msra.mxu0 %v3438_v0  ;;  %3358 = vmatpush1.bf16.msra.mxu1 %v3438_v0  ;;  %p242_p11 = scmp.lt.s32.totalorder %s241_s9, 3135  ;;  %v3444_v8 = vld [vmem:[%s5029_s1 + $0x30] sm:$0xff]   ;;  %v3445_v9 = vld [vmem:[%s5029_s1 + $0x38] sm:$0xff]   ;;  %v1117_v11 = vsel %vm1115_vm1, 4294967295, %v3742_v10  ;;  %v3446_v12 = vld [vmem:[%s5029_s1 + $0x40] sm:$0xff]   ;;  %s4045_s14 = sand.u32 1, %s3723_s16  }
  0x1b   : > { %1124 = vmatprep.subr.bf16.mxu0 %v3741_v1  ;;  %3349 = vmatprep.subr.bf16.mxu1 %v3741_v1  ;;  %v3447_v13 = vld [vmem:[%s5029_s1 + $0x48] ss:$0 sps:$4 sm:$0x33]   ;;  %v1118_v14 = vsel %vm1116_vm2, %v1117_v11, 0  ;;  %s3368_s26 = smul.u32 448, %s4045_s14  ;;  %vm2051_vm3 = vcmask 519168  }
  0x1c   : > { %s5079_s9 = smov (!%p242_p11, %s241_s9), 3135  ;;  %v1120_v16 = vand.u32 %v3447_v13, %v1118_v14  ;;  %vm2164_vm4 = vcmask 523264   ;;  %s2739_s8 = scalar_lea.sflag [#allocation3], %s4045_s14 }
  0x1d   : > { %s3234_s12 = sshll.u32 %s5079_s9, 3  ;;  %s4061_s29 = scalar_lea.vmem [#allocation2], %s3368_s26 }
  0x1e   : > { %1125 = vmatpush1.bf16.msra.mxu0 %v3439_v2  ;;  %3359 = vmatpush1.bf16.msra.mxu1 %v3439_v2  ;;  %s3848_s24 = scalar_lea.vmem %s5028_s0, %s3234_s12  ;;  %s2761_s30 = sshll.u32 %s4061_s29, 4  ;;  %s4630_s30 = int_to_ptr.vmem [resolvable:$true] %s2761_s30 }
  0x1f   : > { %1126 = vmatprep.subr.bf16.mxu0 %v3741_v1  ;;  %3350 = vmatprep.subr.bf16.mxu1 %v3741_v1  ;;  %v3450_v6 = vld [vmem:[%s3848_s24 + $0x4] ss:$8 sps:$4 sm:$0xff]   ;;  %v3448_v17 = vld [vmem:[%s3848_s24] ss:$8 sps:$4 sm:$0xff]   ;;  %v3451_v18 = vld [vmem:[%s3848_s24 + $0x14] ss:$8 sps:$4 sm:$0xff]  }
  0x20   : > { %3061 = vmatprep.mubr.msk.bf16.mxu0 %vm946_vm0, %v3450_v6  ;;  %v3492_v15 = vld [vmem:[%s3848_s24 + $0x1c4] ss:$8 sps:$4 sm:$0xff]   ;;  %v3490_v19 = vld [vmem:[%s3848_s24 + $0x1c0] ss:$8 sps:$4 sm:$0xff]   ;;  %v3496_v20 = vld [vmem:[%s3848_s24 + $0x1d4] ss:$8 sps:$4 sm:$0xff]  }
  0x21   : > { %3089 = vmatprep.mubr.msk.bf16.mxu1 %vm946_vm0, %v3492_v15  ;;  %v3453_v21 = vld [vmem:[%s3848_s24 + $0x10] ss:$8 sps:$4 sm:$0xff]   ;;  %v3454_v23 = vld [vmem:[%s3848_s24 + $0x24] ss:$8 sps:$4 sm:$0xff]   ;;  %v3456_v25 = vld [vmem:[%s3848_s24 + $0x20] ss:$8 sps:$4 sm:$0xff]  }
  0x22   : > { %1127 = vmatpush1.bf16.msra.mxu0 %v3440_v3  ;;  %3360 = vmatpush1.bf16.msra.mxu1 %v3440_v3  ;;  %v3498_v22 = vld [vmem:[%s3848_s24 + $0x1d0] ss:$8 sps:$4 sm:$0xff]   ;;  %v3502_v24 = vld [vmem:[%s3848_s24 + $0x1e4] ss:$8 sps:$4 sm:$0xff]   ;;  %v3504_v26 = vld [vmem:[%s3848_s24 + $0x1e0] ss:$8 sps:$4 sm:$0xff]  }
  0x23   : > { %1128 = vmatprep.subr.bf16.mxu0 %v3741_v1  ;;  %3351 = vmatprep.subr.bf16.mxu1 %v3741_v1  ;;  %v3457_v27 = vld [vmem:[%s3848_s24 + $0x34] ss:$8 sps:$4 sm:$0xff]   ;;  %v3459_v29 = vld [vmem:[%s3848_s24 + $0x30] ss:$8 sps:$4 sm:$0xff]   ;;  %v3460_v31 = vld [vmem:[%s3848_s24 + $0x44] ss:$8 sps:$4 sm:$0xff]  }
  0x24   : > { %v3508_v28 = vld [vmem:[%s3848_s24 + $0x1f4] ss:$8 sps:$4 sm:$0xff]   ;;  %v3510_v30 = vld [vmem:[%s3848_s24 + $0x1f0] ss:$8 sps:$4 sm:$0xff]   ;;  %v3514_v32 = vld [vmem:[%s3848_s24 + $0x204] ss:$8 sps:$4 sm:$0xff]  }
  0x25   : > { %v3462_v33 = vld [vmem:[%s3848_s24 + $0x40] ss:$8 sps:$4 sm:$0xff]   ;;  %v3463_v35 = vld [vmem:[%s3848_s24 + $0x54] ss:$8 sps:$4 sm:$0xff]   ;;  %v3465_v37 = vld [vmem:[%s3848_s24 + $0x50] ss:$8 sps:$4 sm:$0xff]  }
  0x26   : > { %1129 = vmatpush1.bf16.msra.mxu0 %v3441_v4  ;;  %3361 = vmatpush1.bf16.msra.mxu1 %v3441_v4  ;;  %v3516_v34 = vld [vmem:[%s3848_s24 + $0x200] ss:$8 sps:$4 sm:$0xff]   ;;  %v3520_v36 = vld [vmem:[%s3848_s24 + $0x214] ss:$8 sps:$4 sm:$0xff]   ;;  %v3522_v38 = vld [vmem:[%s3848_s24 + $0x210] ss:$8 sps:$4 sm:$0xff]  }
  0x27   : > { %1130 = vmatprep.subr.bf16.mxu0 %v3741_v1  ;;  %3352 = vmatprep.subr.bf16.mxu1 %v3741_v1  ;;  %v3466_v39 = vld [vmem:[%s3848_s24 + $0x64] ss:$8 sps:$4 sm:$0xff]   ;;  %v3468_v41 = vld [vmem:[%s3848_s24 + $0x60] ss:$8 sps:$4 sm:$0xff]   ;;  %v3469_v43 = vld [vmem:[%s3848_s24 + $0x74] ss:$8 sps:$4 sm:$0xff]  }
  0x28   : > { %v3526_v40 = vld [vmem:[%s3848_s24 + $0x224] ss:$8 sps:$4 sm:$0xff]   ;;  %v3528_v42 = vld [vmem:[%s3848_s24 + $0x220] ss:$8 sps:$4 sm:$0xff]   ;;  %v3532_v44 = vld [vmem:[%s3848_s24 + $0x234] ss:$8 sps:$4 sm:$0xff]  }
  0x29   : > { %v3471_v45 = vld [vmem:[%s3848_s24 + $0x70] ss:$8 sps:$4 sm:$0xff]   ;;  %v3472_v47 = vld [vmem:[%s3848_s24 + $0x84] ss:$8 sps:$4 sm:$0xff]   ;;  %v3474_v49 = vld [vmem:[%s3848_s24 + $0x80] ss:$8 sps:$4 sm:$0xff]  }
  0x2a   : > { %1131 = vmatpush1.bf16.msra.mxu0 %v3442_v5  ;;  %3362 = vmatpush1.bf16.msra.mxu1 %v3442_v5  ;;  %v3534_v46 = vld [vmem:[%s3848_s24 + $0x230] ss:$8 sps:$4 sm:$0xff]   ;;  %v3538_v48 = vld [vmem:[%s3848_s24 + $0x244] ss:$8 sps:$4 sm:$0xff]   ;;  %v3540_v50 = vld [vmem:[%s3848_s24 + $0x240] ss:$8 sps:$4 sm:$0xff]  }
  0x2b   : > { %1132 = vmatprep.subr.bf16.mxu0 %v3741_v1  ;;  %3353 = vmatprep.subr.bf16.mxu1 %v3741_v1  ;;  %v3475_v51 = vld [vmem:[%s3848_s24 + $0x94] ss:$8 sps:$4 sm:$0xff]   ;;  %v3477_v53 = vld [vmem:[%s3848_s24 + $0x90] ss:$8 sps:$4 sm:$0xff]   ;;  %v3478_v55 = vld [vmem:[%s3848_s24 + $0xa4] ss:$8 sps:$4 sm:$0xff]  }
  0x2c   : > { %v3544_v52 = vld [vmem:[%s3848_s24 + $0x254] ss:$8 sps:$4 sm:$0xff]   ;;  %v3546_v54 = vld [vmem:[%s3848_s24 + $0x250] ss:$8 sps:$4 sm:$0xff]   ;;  %v3550_v56 = vld [vmem:[%s3848_s24 + $0x264] ss:$8 sps:$4 sm:$0xff]  }
  0x2d   : > { %v3480_v57 = vld [vmem:[%s3848_s24 + $0xa0] ss:$8 sps:$4 sm:$0xff]   ;;  %v3481_v59 = vld [vmem:[%s3848_s24 + $0xb4] ss:$8 sps:$4 sm:$0xff]   ;;  %v3483_v61 = vld [vmem:[%s3848_s24 + $0xb0] ss:$8 sps:$4 sm:$0xff]  }
  0x2e   : > { %1133 = vmatpush1.bf16.msra.mxu0 %v3443_v7  ;;  %3363 = vmatpush1.bf16.msra.mxu1 %v3443_v7  ;;  %v3552_v58 = vld [vmem:[%s3848_s24 + $0x260] ss:$8 sps:$4 sm:$0xff]   ;;  %v3556_v60 = vld [vmem:[%s3848_s24 + $0x274] ss:$8 sps:$4 sm:$0xff]   ;;  %v3558_v62 = vld [vmem:[%s3848_s24 + $0x270] ss:$8 sps:$4 sm:$0xff]  }
  0x2f   : > { %1134 = vmatprep.subr.bf16.mxu0 %v3741_v1  ;;  %3354 = vmatprep.subr.bf16.mxu1 %v3741_v1  ;;  %v3484_v63 = vld [vmem:[%s3848_s24 + $0xc4] ss:$8 sps:$4 sm:$0xff]   ;;  %v3564_v2 = vld [vmem:[%s3848_s24 + $0x280] ss:$8 sps:$4 sm:$0xff]   ;;  %v3487_v3 = vld [vmem:[%s3848_s24 + $0xd4] ss:$8 sps:$4 sm:$0xff]  }
  0x30   : > { %v3562_v0 = vld [vmem:[%s3848_s24 + $0x284] ss:$8 sps:$4 sm:$0xff]   ;;  %v3568_v4 = vld [vmem:[%s3848_s24 + $0x294] ss:$8 sps:$4 sm:$0xff]   ;;  %v3489_v7 = vld [vmem:[%s3848_s24 + $0xd0] ss:$8 sps:$4 sm:$0xff]  }
  0x31   : > { %v336_v5 = vld [vmem:[%s3848_s24 + $0x290] sm:$0xff]  ;;  %v337_v6 = vld [vmem:[%s3848_s24 + $0x298] sm:$0xff]  ;;  %v3573_v10 = vld [vmem:[%s3848_s24 + $0x2a4] ss:$8 sps:$4 sm:$0xff]   ;;  %s3601_s9 = scalar_lea.vmem %s4630_s30, 7168  ;;  %s3743_s10 = smov [#allocation2]  }
  0x32   : > { %1135 = vmatpush1.bf16.msra.mxu0 %v3444_v8  ;;  %3364 = vmatpush1.bf16.msra.mxu1 %v3444_v8  ;;  %v3021_v8 = vcombine.low %v336_v5, %v337_v6  ;;  %v338_v11 = vld [vmem:[%s3848_s24 + $0x2a0] sm:$0xff]  ;;  %v3499_v15 = vld [vmem:[%s3848_s24 + $0xf4] ss:$8 sps:$4 sm:$0xff]   ;;  %p3602_p12 = scmp.ne.s32.totalorder %s4630_s30, %s3601_s9  ;;  %s3605_s11 = sshll.u32 %s3743_s10, 4  ;;  %s3606_s11 = int_to_ptr.vmem [resolvable:$false] %s3605_s11 }
  0x33   : > { %1136 = vmatprep.subr.bf16.mxu0 %v3741_v1  ;;  %3355 = vmatprep.subr.bf16.mxu1 %v3741_v1  ;;  %v3495_v13 = vld [vmem:[%s3848_s24 + $0xe0] ss:$8 sps:$4 sm:$0xff]   ;;  %v3553_v5 = vld [vmem:[%s3848_s24 + $0x184] ss:$8 sps:$4 sm:$0xff]   ;;  %s3607_s12 = scalar_lea.vmem %s3606_s11, 14336  ;;  %p3608_p1 = scmp.lt.s32.totalorder %s4630_s30, %s3606_s11 }
  0x34   : > { %v3593_v6 = vld [vmem:[%s3848_s24 + $0x344] ss:$8 sps:$4 sm:$0xff]   ;;  %p3603_p13 = pnand %p3602_p12, %p3815_p4  ;;  %p3609_p2 = scmp.lt.s32.totalorder %s3607_s12, %s3601_s9 }
  0x36   : > { %1137 = vmatpush1.bf16.msra.mxu0 %v3445_v9  ;;  %3365 = vmatpush1.bf16.msra.mxu1 %v3445_v9  ;;  %v3493_v9 = vld [vmem:[%s3848_s24 + $0xe4] ss:$8 sps:$4 sm:$0xff]   ;;  %p3604_p0 = pneg %p3603_p13  ;;  %p3610_p3 = por %p3609_p2, %p3608_p1 }
  0x37   : > { %1138 = vmatprep.subr.bf16.mxu0 %v3741_v1  ;;  %3356 = vmatprep.subr.bf16.mxu1 %v3741_v1 }
  0x38   : > { %p3611_p5 = pnand %p3610_p3, %p3604_p0 }
  0x3a   : > { %1139 = vmatpush1.bf16.msra.mxu0 %v3446_v12  ;;  %3366 = vmatpush1.bf16.msra.mxu1 %v3446_v12  ;;  %v339_v12 = vld [vmem:[%s3848_s24 + $0x2a8] sm:$0xff] }
  0x3b   : > { %1140 = vmatprep.subr.bf16.mxu0 %v3741_v1  ;;  %3357 = vmatprep.subr.bf16.mxu1 %v3741_v1  ;;  %v3486_v1 = vld [vmem:[%s3848_s24 + $0xc0] ss:$8 sps:$4 sm:$0xff]   ;;  %v3023_v14 = vcombine.low %v338_v11, %v339_v12  ;;  %v3559_v11 = vld [vmem:[%s3848_s24 + $0x194] ss:$8 sps:$4 sm:$0xff]  }
  0x3c   : > { %v3595_v12 = vld [vmem:[%s3848_s24 + $0x354] ss:$8 sps:$4 sm:$0xff]  }
  0x3e   : > { %1141 = vmatpush1.bf16.msra.mxu0 %v1120_v16  ;;  %3367 = vmatpush1.bf16.msra.mxu1 %v1120_v16  ;;  %v3575_v16 = vld [vmem:[%s3848_s24 + $0x2b4] ss:$8 sps:$4 sm:$0xff]  }
  0x41   : > { %1155 = vmatmul.mubr.bf16.vlgmr.msra.gmra.mrb[0].mxu0 %v3448_v17  ;;  %1379 = vmatmul.mubr.bf16.vlgmr.msra.gmra.mrb[0].mxu1 %v3490_v19  ;;  %v340_v17 = vld [vmem:[%s3848_s24 + $0x2b0] sm:$0xff] }
  0x42   : > { %3062 = vmatprep.mubr.msk.bf16.mxu0 %vm946_vm0, %v3451_v18  ;;  %3090 = vmatprep.mubr.msk.bf16.mxu1 %vm946_vm0, %v3496_v20  ;;  %v341_v18 = vld [vmem:[%s3848_s24 + $0x2b8] sm:$0xff] }
  0x43   : > { %v3501_v19 = vld [vmem:[%s3848_s24 + $0xf0] ss:$8 sps:$4 sm:$0xff]   ;;  %v3025_v20 = vcombine.low %v340_v17, %v341_v18  ;;  %v3565_v17 = vld [vmem:[%s3848_s24 + $0x1a4] ss:$8 sps:$4 sm:$0xff]  }
  0x44   : > { %v3597_v18 = vld [vmem:[%s3848_s24 + $0x364] ss:$8 sps:$4 sm:$0xff]  }
  0x49   : > { %1163 = vmatmul.mubr.bf16.gmra.mrb[4].mxu0 %v3453_v21  ;;  %1387 = vmatmul.mubr.bf16.gmra.mrb[4].mxu1 %v3498_v22  ;;  %v3505_v21 = vld [vmem:[%s3848_s24 + $0x104] ss:$8 sps:$4 sm:$0xff]  }
  0x4a   : > { %3063 = vmatprep.mubr.msk.bf16.mxu0 %vm946_vm0, %v3454_v23  ;;  %3091 = vmatprep.mubr.msk.bf16.mxu1 %vm946_vm0, %v3502_v24  ;;  %v3577_v22 = vld [vmem:[%s3848_s24 + $0x2c4] ss:$8 sps:$4 sm:$0xff]  }
  0x4b   : > { %v342_v23 = vld [vmem:[%s3848_s24 + $0x2c0] sm:$0xff]  ;;  %v343_v24 = vld [vmem:[%s3848_s24 + $0x2c8] sm:$0xff] }
  0x51   : > { %1171 = vmatmul.mubr.bf16.gmra.mrb[8].mxu0 %v3456_v25  ;;  %1395 = vmatmul.mubr.bf16.gmra.mrb[8].mxu1 %v3504_v26  ;;  %v3507_v25 = vld [vmem:[%s3848_s24 + $0x100] ss:$8 sps:$4 sm:$0xff]   ;;  %v3027_v26 = vcombine.low %v342_v23, %v343_v24  ;;  %v3570_v23 = vld [vmem:[%s3848_s24 + $0x1b4] ss:$8 sps:$4 sm:$0xff]  }
  0x52   : > { %3064 = vmatprep.mubr.msk.bf16.mxu0 %vm946_vm0, %v3457_v27  ;;  %3092 = vmatprep.mubr.msk.bf16.mxu1 %vm946_vm0, %v3508_v28  ;;  %v3511_v27 = vld [vmem:[%s3848_s24 + $0x114] ss:$8 sps:$4 sm:$0xff]  }
  0x53   : > { %v3579_v28 = vld [vmem:[%s3848_s24 + $0x2d4] ss:$8 sps:$4 sm:$0xff]  }
  0x54   : > { %v3599_v24 = vld [vmem:[%s3848_s24 + $0x374] ss:$8 sps:$4 sm:$0xff]  }
  0x59   : > { %1179 = vmatmul.mubr.bf16.gmra.mrb[12].mxu0 %v3459_v29  ;;  %1403 = vmatmul.mubr.bf16.gmra.mrb[12].mxu1 %v3510_v30  ;;  %v344_v29 = vld [vmem:[%s3848_s24 + $0x2d0] sm:$0xff]  ;;  %v345_v30 = vld [vmem:[%s3848_s24 + $0x2d8] sm:$0xff] }
  0x5a   : > { %3065 = vmatprep.mubr.msk.bf16.mxu0 %vm946_vm0, %v3460_v31  ;;  %3093 = vmatprep.mubr.msk.bf16.mxu1 %vm946_vm0, %v3514_v32  ;;  %v3513_v31 = vld [vmem:[%s3848_s24 + $0x110] ss:$8 sps:$4 sm:$0xff]   ;;  %v3029_v32 = vcombine.low %v344_v29, %v345_v30 }
  0x61   : > { %1187 = vmatmul.mubr.bf16.gmra.mrb[16].mxu0 %v3462_v33  ;;  %1411 = vmatmul.mubr.bf16.gmra.mrb[16].mxu1 %v3516_v34  ;;  %v3517_v33 = vld [vmem:[%s3848_s24 + $0x124] ss:$8 sps:$4 sm:$0xff]  }
  0x62   : > { %3066 = vmatprep.mubr.msk.bf16.mxu0 %vm946_vm0, %v3463_v35  ;;  %3094 = vmatprep.mubr.msk.bf16.mxu1 %vm946_vm0, %v3520_v36  ;;  %v3581_v34 = vld [vmem:[%s3848_s24 + $0x2e4] ss:$8 sps:$4 sm:$0xff]  }
  0x63   : > { %v346_v35 = vld [vmem:[%s3848_s24 + $0x2e0] sm:$0xff]  ;;  %v347_v36 = vld [vmem:[%s3848_s24 + $0x2e8] sm:$0xff] }
  0x69   : > { %1195 = vmatmul.mubr.bf16.gmra.mrb[20].mxu0 %v3465_v37  ;;  %1419 = vmatmul.mubr.bf16.gmra.mrb[20].mxu1 %v3522_v38  ;;  %v3519_v37 = vld [vmem:[%s3848_s24 + $0x120] ss:$8 sps:$4 sm:$0xff]   ;;  %v3031_v38 = vcombine.low %v346_v35, %v347_v36 }
  0x6a   : > { %3067 = vmatprep.mubr.msk.bf16.mxu0 %vm946_vm0, %v3466_v39  ;;  %3095 = vmatprep.mubr.msk.bf16.mxu1 %vm946_vm0, %v3526_v40  ;;  %v3523_v39 = vld [vmem:[%s3848_s24 + $0x134] ss:$8 sps:$4 sm:$0xff]  }
  0x6b   : > { %v3583_v40 = vld [vmem:[%s3848_s24 + $0x2f4] ss:$8 sps:$4 sm:$0xff]  }
  0x71   : > { %1203 = vmatmul.mubr.bf16.gmra.mrb[24].mxu0 %v3468_v41  ;;  %1427 = vmatmul.mubr.bf16.gmra.mrb[24].mxu1 %v3528_v42  ;;  %v348_v41 = vld [vmem:[%s3848_s24 + $0x2f0] sm:$0xff]  ;;  %v349_v42 = vld [vmem:[%s3848_s24 + $0x2f8] sm:$0xff] }
  0x72   : > { %3068 = vmatprep.mubr.msk.bf16.mxu0 %vm946_vm0, %v3469_v43  ;;  %3096 = vmatprep.mubr.msk.bf16.mxu1 %vm946_vm0, %v3532_v44  ;;  %v3525_v43 = vld [vmem:[%s3848_s24 + $0x130] ss:$8 sps:$4 sm:$0xff]   ;;  %v3033_v44 = vcombine.low %v348_v41, %v349_v42 }
  0x79   : > { %1211 = vmatmul.mubr.bf16.gmra.mrb[28].mxu0 %v3471_v45  ;;  %1435 = vmatmul.mubr.bf16.gmra.mrb[28].mxu1 %v3534_v46  ;;  %v3529_v45 = vld [vmem:[%s3848_s24 + $0x144] ss:$8 sps:$4 sm:$0xff]  }
  0x7a   : > { %3069 = vmatprep.mubr.msk.bf16.mxu0 %vm946_vm0, %v3472_v47  ;;  %3097 = vmatprep.mubr.msk.bf16.mxu1 %vm946_vm0, %v3538_v48  ;;  %v3585_v46 = vld [vmem:[%s3848_s24 + $0x304] ss:$8 sps:$4 sm:$0xff]  }
  0x7b   : > { %v350_v47 = vld [vmem:[%s3848_s24 + $0x300] sm:$0xff]  ;;  %v351_v48 = vld [vmem:[%s3848_s24 + $0x308] sm:$0xff] }
  0x81   : > { %1219 = vmatmul.mubr.bf16.gmra.mrb[32].mxu0 %v3474_v49  ;;  %1443 = vmatmul.mubr.bf16.gmra.mrb[32].mxu1 %v3540_v50  ;;  %v3531_v49 = vld [vmem:[%s3848_s24 + $0x140] ss:$8 sps:$4 sm:$0xff]   ;;  %v3035_v50 = vcombine.low %v350_v47, %v351_v48 }
  0x82   : > { %3070 = vmatprep.mubr.msk.bf16.mxu0 %vm946_vm0, %v3475_v51  ;;  %3098 = vmatprep.mubr.msk.bf16.mxu1 %vm946_vm0, %v3544_v52  ;;  %v3535_v51 = vld [vmem:[%s3848_s24 + $0x154] ss:$8 sps:$4 sm:$0xff]  }
  0x83   : > { %v3587_v52 = vld [vmem:[%s3848_s24 + $0x314] ss:$8 sps:$4 sm:$0xff]  }
  0x89   : > { %1227 = vmatmul.mubr.bf16.gmra.mrb[36].mxu0 %v3477_v53  ;;  %1451 = vmatmul.mubr.bf16.gmra.mrb[36].mxu1 %v3546_v54  ;;  %v352_v53 = vld [vmem:[%s3848_s24 + $0x310] sm:$0xff]  ;;  %v353_v54 = vld [vmem:[%s3848_s24 + $0x318] sm:$0xff] }
  0x8a   : > { %3071 = vmatprep.mubr.msk.bf16.mxu0 %vm946_vm0, %v3478_v55  ;;  %3099 = vmatprep.mubr.msk.bf16.mxu1 %vm946_vm0, %v3550_v56  ;;  %v3537_v55 = vld [vmem:[%s3848_s24 + $0x150] ss:$8 sps:$4 sm:$0xff]   ;;  %v3037_v56 = vcombine.low %v352_v53, %v353_v54 }
  0x91   : > { %1235 = vmatmul.mubr.bf16.gmra.mrb[40].mxu0 %v3480_v57  ;;  %1459 = vmatmul.mubr.bf16.gmra.mrb[40].mxu1 %v3552_v58  ;;  %v3541_v57 = vld [vmem:[%s3848_s24 + $0x164] ss:$8 sps:$4 sm:$0xff]  }
  0x92   : > { %3072 = vmatprep.mubr.msk.bf16.mxu0 %vm946_vm0, %v3481_v59  ;;  %3100 = vmatprep.mubr.msk.bf16.mxu1 %vm946_vm0, %v3556_v60  ;;  %v3589_v58 = vld [vmem:[%s3848_s24 + $0x324] ss:$8 sps:$4 sm:$0xff]  }
  0x93   : > { %v354_v59 = vld [vmem:[%s3848_s24 + $0x320] sm:$0xff]  ;;  %v355_v60 = vld [vmem:[%s3848_s24 + $0x328] sm:$0xff] }
  0x99   : > { %1243 = vmatmul.mubr.bf16.gmra.mrb[44].mxu0 %v3483_v61  ;;  %1467 = vmatmul.mubr.bf16.gmra.mrb[44].mxu1 %v3558_v62  ;;  %v3543_v61 = vld [vmem:[%s3848_s24 + $0x160] ss:$8 sps:$4 sm:$0xff]   ;;  %v3039_v62 = vcombine.low %v354_v59, %v355_v60 }
  0x9a   : > { %3073 = vmatprep.mubr.msk.bf16.mxu0 %vm946_vm0, %v3484_v63  ;;  %3101 = vmatprep.mubr.msk.bf16.mxu1 %vm946_vm0, %v3562_v0  ;;  %v3547_v63 = vld [vmem:[%s3848_s24 + $0x174] ss:$8 sps:$4 sm:$0xff]  }
  0x9b   : > { %v3591_v0 = vld [vmem:[%s3848_s24 + $0x334] ss:$8 sps:$4 sm:$0xff]  }
  0xa1   : > { %1251 = vmatmul.mubr.bf16.gmra.mrb[48].mxu0 %v3486_v1  ;;  %1475 = vmatmul.mubr.bf16.gmra.mrb[48].mxu1 %v3564_v2  ;;  %v356_v1 = vld [vmem:[%s3848_s24 + $0x330] sm:$0xff]  ;;  %v357_v2 = vld [vmem:[%s3848_s24 + $0x338] sm:$0xff] }
  0xa2   : > { %3074 = vmatprep.mubr.msk.bf16.mxu0 %vm946_vm0, %v3487_v3  ;;  %3102 = vmatprep.mubr.msk.bf16.mxu1 %vm946_vm0, %v3568_v4  ;;  %v3549_v3 = vld [vmem:[%s3848_s24 + $0x170] ss:$8 sps:$4 sm:$0xff]   ;;  %v3041_v4 = vcombine.low %v356_v1, %v357_v2 }
  0xa9   : > { %1259 = vmatmul.mubr.bf16.gmra.mrb[52].mxu0 %v3489_v7  ;;  %1483 = vmatmul.mubr.bf16.gmra.mrb[52].mxu1 %v3021_v8  ;;  %v358_v7 = vld [vmem:[%s3848_s24 + $0x340] sm:$0xff]  ;;  %v359_v8 = vld [vmem:[%s3848_s24 + $0x348] sm:$0xff] }
  0xaa   : > { %3075 = vmatprep.mubr.msk.bf16.mxu0 %vm946_vm0, %v3493_v9  ;;  %3103 = vmatprep.mubr.msk.bf16.mxu1 %vm946_vm0, %v3573_v10  ;;  %v3555_v9 = vld [vmem:[%s3848_s24 + $0x180] ss:$8 sps:$4 sm:$0xff]   ;;  %v3043_v10 = vcombine.low %v358_v7, %v359_v8 }
  0xb1   : > { %1267 = vmatmul.mubr.bf16.gmra.mrb[56].mxu0 %v3495_v13  ;;  %1491 = vmatmul.mubr.bf16.gmra.mrb[56].mxu1 %v3023_v14  ;;  %v360_v13 = vld [vmem:[%s3848_s24 + $0x350] sm:$0xff]  ;;  %v361_v14 = vld [vmem:[%s3848_s24 + $0x358] sm:$0xff] }
  0xb2   : > { %3076 = vmatprep.mubr.msk.bf16.mxu0 %vm946_vm0, %v3499_v15  ;;  %3104 = vmatprep.mubr.msk.bf16.mxu1 %vm946_vm0, %v3575_v16  ;;  %v3561_v15 = vld [vmem:[%s3848_s24 + $0x190] ss:$8 sps:$4 sm:$0xff]   ;;  %v3045_v16 = vcombine.low %v360_v13, %v361_v14 }
  0xb9   : > { %1275 = vmatmul.mubr.bf16.gmra.mrb[60].mxu0 %v3501_v19  ;;  %1499 = vmatmul.mubr.bf16.gmra.mrb[60].mxu1 %v3025_v20  ;;  %v362_v19 = vld [vmem:[%s3848_s24 + $0x360] sm:$0xff]  ;;  %v363_v20 = vld [vmem:[%s3848_s24 + $0x368] sm:$0xff] }
  0xba   : > { %3077 = vmatprep.mubr.msk.bf16.mxu0 %vm946_vm0, %v3505_v21  ;;  %3105 = vmatprep.mubr.msk.bf16.mxu1 %vm946_vm0, %v3577_v22  ;;  %v3567_v21 = vld [vmem:[%s3848_s24 + $0x1a0] ss:$8 sps:$4 sm:$0xff]   ;;  %v3047_v22 = vcombine.low %v362_v19, %v363_v20 }
  0xc1   : > { %1283 = vmatmul.mubr.bf16.gmra.mrb[64].mxu0 %v3507_v25  ;;  %1507 = vmatmul.mubr.bf16.gmra.mrb[64].mxu1 %v3027_v26  ;;  %v364_v25 = vld [vmem:[%s3848_s24 + $0x370] sm:$0xff]  ;;  %v365_v26 = vld [vmem:[%s3848_s24 + $0x378] sm:$0xff] }
  0xc2   : > { %3078 = vmatprep.mubr.msk.bf16.mxu0 %vm946_vm0, %v3511_v27  ;;  %3106 = vmatprep.mubr.msk.bf16.mxu1 %vm946_vm0, %v3579_v28  ;;  %v3049_v35 = vcombine.low %v364_v25, %v365_v26 }
  0xc9   : > { %1291 = vmatmul.mubr.bf16.gmra.mrb[68].mxu0 %v3513_v31  ;;  %1515 = vmatmul.mubr.bf16.gmra.mrb[68].mxu1 %v3029_v32  ;;  %v3572_v32 = vld [vmem:[%s3848_s24 + $0x1b0] ss:$8 sps:$4 sm:$0xff]   ;;  %s3347_s24 = smul.u32 7168, %s3731_s18 }
  0xca   : > { %3079 = vmatprep.mubr.msk.bf16.mxu0 %vm946_vm0, %v3517_v33  ;;  %3107 = vmatprep.mubr.msk.bf16.mxu1 %vm946_vm0, %v3581_v34 }
  0xcb   : > { %s4635_s7 = scalar_lea.hbm %s5030_s2, %s3347_s24 }
  0xd1   : > { %1299 = vmatmul.mubr.bf16.gmra.mrb[72].mxu0 %v3519_v37  ;;  %1523 = vmatmul.mubr.bf16.gmra.mrb[72].mxu1 %v3031_v38 }
  0xd2   : > { %3080 = vmatprep.mubr.msk.bf16.mxu0 %vm946_vm0, %v3523_v39  ;;  %3108 = vmatprep.mubr.msk.bf16.mxu1 %vm946_vm0, %v3583_v40 }
  0xd9   : > { %1307 = vmatmul.mubr.bf16.gmra.mrb[76].mxu0 %v3525_v43  ;;  %1531 = vmatmul.mubr.bf16.gmra.mrb[76].mxu1 %v3033_v44 }
  0xda   : > { %3081 = vmatprep.mubr.msk.bf16.mxu0 %vm946_vm0, %v3529_v45  ;;  %3109 = vmatprep.mubr.msk.bf16.mxu1 %vm946_vm0, %v3585_v46 }
  0xe1   : > { %1315 = vmatmul.mubr.bf16.gmra.mrb[80].mxu0 %v3531_v49  ;;  %1539 = vmatmul.mubr.bf16.gmra.mrb[80].mxu1 %v3035_v50 }
  0xe2   : > { %3082 = vmatprep.mubr.msk.bf16.mxu0 %vm946_vm0, %v3535_v51  ;;  %3110 = vmatprep.mubr.msk.bf16.mxu1 %vm946_vm0, %v3587_v52 }
  0xe9   : > { %1323 = vmatmul.mubr.bf16.gmra.mrb[84].mxu0 %v3537_v55  ;;  %1547 = vmatmul.mubr.bf16.gmra.mrb[84].mxu1 %v3037_v56 }
  0xea   : > { %3083 = vmatprep.mubr.msk.bf16.mxu0 %vm946_vm0, %v3541_v57  ;;  %3111 = vmatprep.mubr.msk.bf16.mxu1 %vm946_vm0, %v3589_v58 }
  0xf1   : > { %1331 = vmatmul.mubr.bf16.gmra.mrb[88].mxu0 %v3543_v61  ;;  %1555 = vmatmul.mubr.bf16.gmra.mrb[88].mxu1 %v3039_v62 }
  0xf2   : > { %3084 = vmatprep.mubr.msk.bf16.mxu0 %vm946_vm0, %v3547_v63  ;;  %3112 = vmatprep.mubr.msk.bf16.mxu1 %vm946_vm0, %v3591_v0 }
  0xf9   : > { %1339 = vmatmul.mubr.bf16.gmra.mrb[92].mxu0 %v3549_v3  ;;  %1563 = vmatmul.mubr.bf16.gmra.mrb[92].mxu1 %v3041_v4 }
  0xfa   : > { %3085 = vmatprep.mubr.msk.bf16.mxu0 %vm946_vm0, %v3553_v5  ;;  %3113 = vmatprep.mubr.msk.bf16.mxu1 %vm946_vm0, %v3593_v6 }
 0x101   : > { %1347 = vmatmul.mubr.bf16.gmra.mrb[96].mxu0 %v3555_v9  ;;  %1571 = vmatmul.mubr.bf16.gmra.mrb[96].mxu1 %v3043_v10 }
 0x102   : > { %3086 = vmatprep.mubr.msk.bf16.mxu0 %vm946_vm0, %v3559_v11  ;;  %3114 = vmatprep.mubr.msk.bf16.mxu1 %vm946_vm0, %v3595_v12 }
 0x109   : > { %1355 = vmatmul.mubr.bf16.gmra.mrb[100].mxu0 %v3561_v15  ;;  %1579 = vmatmul.mubr.bf16.gmra.mrb[100].mxu1 %v3045_v16 }
 0x10a   : > { %3087 = vmatprep.mubr.msk.bf16.mxu0 %vm946_vm0, %v3565_v17  ;;  %3115 = vmatprep.mubr.msk.bf16.mxu1 %vm946_vm0, %v3597_v18 }
 0x111   : > { %1363 = vmatmul.mubr.bf16.gmra.mrb[104].mxu0 %v3567_v21  ;;  %1587 = vmatmul.mubr.bf16.gmra.mrb[104].mxu1 %v3047_v22 }
 0x112   : > { %3088 = vmatprep.mubr.msk.bf16.mxu0 %vm946_vm0, %v3570_v23  ;;  %3116 = vmatprep.mubr.msk.bf16.mxu1 %vm946_vm0, %v3599_v24 }
 0x114   : > { %v1156_v27 = vpop.f32.mrb[0].mxu0  ;;  %v4054_v28 = vpop.f32.mrb[0].mxu1 }
 0x115   : > { %v3235_v29 = vpack.c.bf16 %v1156_v27, %v1156_v27  ;;  %v2396_v30 = vmul.f32 %v1156_v27, %v1156_v27  ;;  %v1158_v31 = vpop.f32.mrb[1].mxu0  ;;  %v3291_v33 = vpack.c.bf16 %v4054_v28, %v4054_v28  ;;  %v1382_v34 = vpop.f32.mrb[1].mxu1  ;;  %v2165_v38 = vsel %vm2164_vm4, %v1156_v27, 0.0 }
 0x116   : > { %v1159_v36 = vpop.f32.mrb[2].mxu0  ;;  %v4059_v37 = vpop.f32.mrb[2].mxu1 }
 0x117   : > { %2052 = vst.msk [vmem:[%s4061_s29] sm:$0xf] %vm2051_vm3, %v3235_v29  ;;  %v3236_v39 = vpack.c.bf16 %v1159_v36, %v1159_v36  ;;  %v2166_v40 = vsel %vm2164_vm4, %v1159_v36, 0.0  ;;  %v2397_v41 = vmul.f32 %v1159_v36, %v1159_v36  ;;  %v1161_v42 = vpop.f32.mrb[3].mxu0  ;;  %2108 = vst.msk [vmem:[%s4061_s29 + $0xe0] sm:$0xf] %vm2051_vm3, %v3291_v33  ;;  %v3292_v45 = vpack.c.bf16 %v4059_v37, %v4059_v37 }
 0x118   : > { %v1385_v43 = vpop.f32.mrb[3].mxu1  ;;  %v2167_v44 = vadd.f32 %v2166_v40, %v2165_v38  ;;  %v2508_v46 = vsel %vm2164_vm4, %v2396_v30, 0.0 }
 0x119   : > { %2053 = vst.msk [vmem:[%s4061_s29 + $0x4] sm:$0xf] %vm2051_vm3, %v3236_v39  ;;  %v2509_v47 = vsel %vm2164_vm4, %v2397_v41, 0.0  ;;  %1371 = vmatmul.mubr.bf16.gmra.mrb[108].mxu0 %v3572_v32  ;;  %1595 = vmatmul.mubr.bf16.gmra.mrb[108].mxu1 %v3049_v35  ;;  %2109 = vst.msk [vmem:[%s4061_s29 + $0xe4] sm:$0xf] %vm2051_vm3, %v3292_v45 }
 0x11a   : > { %v2510_v48 = vadd.f32 %v2509_v47, %v2508_v46 }
 0x11c   : > { %v1164_v49 = vpop.f32.mrb[4].mxu0  ;;  %v4077_v50 = vpop.f32.mrb[4].mxu1 }
 0x11d   : > { %v3237_v51 = vpack.c.bf16 %v1164_v49, %v1164_v49  ;;  %v2168_v52 = vsel %vm2164_vm4, %v1164_v49, 0.0  ;;  %v2398_v53 = vmul.f32 %v1164_v49, %v1164_v49  ;;  %v1166_v54 = vpop.f32.mrb[5].mxu0  ;;  %v3293_v55 = vpack.c.bf16 %v4077_v50, %v4077_v50  ;;  %v1390_v56 = vpop.f32.mrb[5].mxu1 }
 0x11e   : > { %v2169_v57 = vadd.f32 %v2168_v52, %v2167_v44  ;;  %v1167_v58 = vpop.f32.mrb[6].mxu0  ;;  %v4082_v59 = vpop.f32.mrb[6].mxu1 }
 0x11f   : > { %2054 = vst.msk [vmem:[%s4061_s29 + $0x8] sm:$0xf] %vm2051_vm3, %v3237_v51  ;;  %v2511_v60 = vsel %vm2164_vm4, %v2398_v53, 0.0  ;;  %v3238_v61 = vpack.c.bf16 %v1167_v58, %v1167_v58  ;;  %v2170_v62 = vsel %vm2164_vm4, %v1167_v58, 0.0  ;;  %v2399_v63 = vmul.f32 %v1167_v58, %v1167_v58  ;;  %v1169_v0 = vpop.f32.mrb[7].mxu0  ;;  %v1393_v1 = vpop.f32.mrb[7].mxu1 }
 0x120   : > { %2110 = vst.msk [vmem:[%s4061_s29 + $0xe8] sm:$0xf] %vm2051_vm3, %v3293_v55  ;;  %v2512_v2 = vadd.f32 %v2511_v60, %v2510_v48  ;;  %v2171_v3 = vadd.f32 %v2170_v62, %v2169_v57  ;;  %v3294_v4 = vpack.c.bf16 %v4082_v59, %v4082_v59 }
 0x121   : > { %2055 = vst.msk [vmem:[%s4061_s29 + $0xc] sm:$0xf] %vm2051_vm3, %v3238_v61  ;;  %v2513_v5 = vsel %vm2164_vm4, %v2399_v63, 0.0 }
 0x122   : > { %v2514_v6 = vadd.f32 %v2513_v5, %v2512_v2  ;;  %2111 = vst.msk [vmem:[%s4061_s29 + $0xec] sm:$0xf] %vm2051_vm3, %v3294_v4 }
 0x124   : > { %v1172_v7 = vpop.f32.mrb[8].mxu0  ;;  %v4097_v8 = vpop.f32.mrb[8].mxu1 }
 0x125   : > { %v3239_v9 = vpack.c.bf16 %v1172_v7, %v1172_v7  ;;  %v2172_v10 = vsel %vm2164_vm4, %v1172_v7, 0.0  ;;  %v2400_v11 = vmul.f32 %v1172_v7, %v1172_v7  ;;  %v1174_v12 = vpop.f32.mrb[9].mxu0  ;;  %v3295_v13 = vpack.c.bf16 %v4097_v8, %v4097_v8  ;;  %v1398_v14 = vpop.f32.mrb[9].mxu1 }
 0x126   : > { %v2173_v15 = vadd.f32 %v2172_v10, %v2171_v3  ;;  %v1175_v16 = vpop.f32.mrb[10].mxu0  ;;  %v4102_v17 = vpop.f32.mrb[10].mxu1 }
 0x127   : > { %2056 = vst.msk [vmem:[%s4061_s29 + $0x10] sm:$0xf] %vm2051_vm3, %v3239_v9  ;;  %v2515_v18 = vsel %vm2164_vm4, %v2400_v11, 0.0  ;;  %v3240_v19 = vpack.c.bf16 %v1175_v16, %v1175_v16  ;;  %v2174_v20 = vsel %vm2164_vm4, %v1175_v16, 0.0  ;;  %v2401_v21 = vmul.f32 %v1175_v16, %v1175_v16  ;;  %v1177_v22 = vpop.f32.mrb[11].mxu0  ;;  %v1401_v23 = vpop.f32.mrb[11].mxu1 }
 0x128   : > { %2112 = vst.msk [vmem:[%s4061_s29 + $0xf0] sm:$0xf] %vm2051_vm3, %v3295_v13  ;;  %v2516_v24 = vadd.f32 %v2515_v18, %v2514_v6  ;;  %v2175_v25 = vadd.f32 %v2174_v20, %v2173_v15  ;;  %v3296_v26 = vpack.c.bf16 %v4102_v17, %v4102_v17 }
 0x129   : > { %2057 = vst.msk [vmem:[%s4061_s29 + $0x14] sm:$0xf] %vm2051_vm3, %v3240_v19  ;;  %v2517_v27 = vsel %vm2164_vm4, %v2401_v21, 0.0 }
 0x12a   : > { %v2518_v29 = vadd.f32 %v2517_v27, %v2516_v24  ;;  %2113 = vst.msk [vmem:[%s4061_s29 + $0xf4] sm:$0xf] %vm2051_vm3, %v3296_v26 }
 0x12c   : > { %v1180_v30 = vpop.f32.mrb[12].mxu0  ;;  %v4117_v31 = vpop.f32.mrb[12].mxu1 }
 0x12d   : > { %v3241_v32 = vpack.c.bf16 %v1180_v30, %v1180_v30  ;;  %v2176_v33 = vsel %vm2164_vm4, %v1180_v30, 0.0  ;;  %v2402_v34 = vmul.f32 %v1180_v30, %v1180_v30  ;;  %v1182_v35 = vpop.f32.mrb[13].mxu0  ;;  %v3297_v36 = vpack.c.bf16 %v4117_v31, %v4117_v31  ;;  %v1406_v38 = vpop.f32.mrb[13].mxu1 }
 0x12e   : > { %v2177_v39 = vadd.f32 %v2176_v33, %v2175_v25  ;;  %v1183_v40 = vpop.f32.mrb[14].mxu0  ;;  %v4122_v41 = vpop.f32.mrb[14].mxu1 }
 0x12f   : > { %2058 = vst.msk [vmem:[%s4061_s29 + $0x18] sm:$0xf] %vm2051_vm3, %v3241_v32  ;;  %v2519_v42 = vsel %vm2164_vm4, %v2402_v34, 0.0  ;;  %v3242_v43 = vpack.c.bf16 %v1183_v40, %v1183_v40  ;;  %v2178_v44 = vsel %vm2164_vm4, %v1183_v40, 0.0  ;;  %v2403_v45 = vmul.f32 %v1183_v40, %v1183_v40  ;;  %v1185_v46 = vpop.f32.mrb[15].mxu0  ;;  %v1409_v47 = vpop.f32.mrb[15].mxu1 }
 0x130   : > { %2114 = vst.msk [vmem:[%s4061_s29 + $0xf8] sm:$0xf] %vm2051_vm3, %v3297_v36  ;;  %v2520_v48 = vadd.f32 %v2519_v42, %v2518_v29  ;;  %v2179_v49 = vadd.f32 %v2178_v44, %v2177_v39  ;;  %v3298_v51 = vpack.c.bf16 %v4122_v41, %v4122_v41 }
 0x131   : > { %2059 = vst.msk [vmem:[%s4061_s29 + $0x1c] sm:$0xf] %vm2051_vm3, %v3242_v43  ;;  %v2521_v52 = vsel %vm2164_vm4, %v2403_v45, 0.0 }
 0x132   : > { %v2522_v53 = vadd.f32 %v2521_v52, %v2520_v48  ;;  %2115 = vst.msk [vmem:[%s4061_s29 + $0xfc] sm:$0xf] %vm2051_vm3, %v3298_v51 }
 0x134   : > { %v1188_v54 = vpop.f32.mrb[16].mxu0  ;;  %v4137_v55 = vpop.f32.mrb[16].mxu1 }
 0x135   : > { %v3243_v56 = vpack.c.bf16 %v1188_v54, %v1188_v54  ;;  %v2180_v57 = vsel %vm2164_vm4, %v1188_v54, 0.0  ;;  %v2404_v58 = vmul.f32 %v1188_v54, %v1188_v54  ;;  %v1190_v60 = vpop.f32.mrb[17].mxu0  ;;  %v3299_v61 = vpack.c.bf16 %v4137_v55, %v4137_v55  ;;  %v1414_v62 = vpop.f32.mrb[17].mxu1 }
 0x136   : > { %v2181_v63 = vadd.f32 %v2180_v57, %v2179_v49  ;;  %v1191_v0 = vpop.f32.mrb[18].mxu0  ;;  %v4142_v1 = vpop.f32.mrb[18].mxu1 }
 0x137   : > { %2060 = vst.msk [vmem:[%s4061_s29 + $0x20] sm:$0xf] %vm2051_vm3, %v3243_v56  ;;  %v2523_v2 = vsel %vm2164_vm4, %v2404_v58, 0.0  ;;  %v3244_v3 = vpack.c.bf16 %v1191_v0, %v1191_v0  ;;  %v2182_v4 = vsel %vm2164_vm4, %v1191_v0, 0.0  ;;  %v2405_v5 = vmul.f32 %v1191_v0, %v1191_v0  ;;  %v1193_v6 = vpop.f32.mrb[19].mxu0  ;;  %v1417_v7 = vpop.f32.mrb[19].mxu1 }
 0x138   : > { %2116 = vst.msk [vmem:[%s4061_s29 + $0x100] sm:$0xf] %vm2051_vm3, %v3299_v61  ;;  %v2524_v9 = vadd.f32 %v2523_v2, %v2522_v53  ;;  %v2183_v10 = vadd.f32 %v2182_v4, %v2181_v63  ;;  %v3300_v11 = vpack.c.bf16 %v4142_v1, %v4142_v1 }
 0x139   : > { %2061 = vst.msk [vmem:[%s4061_s29 + $0x24] sm:$0xf] %vm2051_vm3, %v3244_v3  ;;  %v2525_v12 = vsel %vm2164_vm4, %v2405_v5, 0.0 }
 0x13a   : > { %v2526_v13 = vadd.f32 %v2525_v12, %v2524_v9  ;;  %2117 = vst.msk [vmem:[%s4061_s29 + $0x104] sm:$0xf] %vm2051_vm3, %v3300_v11 }
 0x13c   : > { %v1196_v14 = vpop.f32.mrb[20].mxu0  ;;  %v4157_v15 = vpop.f32.mrb[20].mxu1 }
 0x13d   : > { %v3245_v16 = vpack.c.bf16 %v1196_v14, %v1196_v14  ;;  %v2184_v18 = vsel %vm2164_vm4, %v1196_v14, 0.0  ;;  %v2406_v19 = vmul.f32 %v1196_v14, %v1196_v14  ;;  %v1198_v20 = vpop.f32.mrb[21].mxu0  ;;  %v3301_v21 = vpack.c.bf16 %v4157_v15, %v4157_v15  ;;  %v1422_v22 = vpop.f32.mrb[21].mxu1 }
 0x13e   : > { %v2185_v23 = vadd.f32 %v2184_v18, %v2183_v10  ;;  %v1199_v24 = vpop.f32.mrb[22].mxu0  ;;  %v4162_v25 = vpop.f32.mrb[22].mxu1 }
 0x13f   : > { %2062 = vst.msk [vmem:[%s4061_s29 + $0x28] sm:$0xf] %vm2051_vm3, %v3245_v16  ;;  %v2527_v26 = vsel %vm2164_vm4, %v2406_v19, 0.0  ;;  %v3246_v27 = vpack.c.bf16 %v1199_v24, %v1199_v24  ;;  %v2186_v29 = vsel %vm2164_vm4, %v1199_v24, 0.0  ;;  %v2407_v30 = vmul.f32 %v1199_v24, %v1199_v24  ;;  %v1201_v32 = vpop.f32.mrb[23].mxu0  ;;  %v1425_v33 = vpop.f32.mrb[23].mxu1 }
 0x140   : > { %2118 = vst.msk [vmem:[%s4061_s29 + $0x108] sm:$0xf] %vm2051_vm3, %v3301_v21  ;;  %v2528_v34 = vadd.f32 %v2527_v26, %v2526_v13  ;;  %v2187_v35 = vadd.f32 %v2186_v29, %v2185_v23  ;;  %v3302_v36 = vpack.c.bf16 %v4162_v25, %v4162_v25 }
 0x141   : > { %2063 = vst.msk [vmem:[%s4061_s29 + $0x2c] sm:$0xf] %vm2051_vm3, %v3246_v27  ;;  %v2529_v38 = vsel %vm2164_vm4, %v2407_v30, 0.0 }
 0x142   : > { %v2530_v39 = vadd.f32 %v2529_v38, %v2528_v34  ;;  %2119 = vst.msk [vmem:[%s4061_s29 + $0x10c] sm:$0xf] %vm2051_vm3, %v3302_v36 }
 0x144   : > { %v1204_v40 = vpop.f32.mrb[24].mxu0  ;;  %v4177_v42 = vpop.f32.mrb[24].mxu1 }
 0x145   : > { %v3247_v43 = vpack.c.bf16 %v1204_v40, %v1204_v40  ;;  %v2188_v44 = vsel %vm2164_vm4, %v1204_v40, 0.0  ;;  %v2408_v45 = vmul.f32 %v1204_v40, %v1204_v40  ;;  %v1206_v46 = vpop.f32.mrb[25].mxu0  ;;  %v3303_v47 = vpack.c.bf16 %v4177_v42, %v4177_v42  ;;  %v1430_v48 = vpop.f32.mrb[25].mxu1 }
 0x146   : > { %v2189_v49 = vadd.f32 %v2188_v44, %v2187_v35  ;;  %v1207_v51 = vpop.f32.mrb[26].mxu0  ;;  %v4182_v52 = vpop.f32.mrb[26].mxu1 }
 0x147   : > { %2064 = vst.msk [vmem:[%s4061_s29 + $0x30] sm:$0xf] %vm2051_vm3, %v3247_v43  ;;  %v2531_v53 = vsel %vm2164_vm4, %v2408_v45, 0.0  ;;  %v3248_v54 = vpack.c.bf16 %v1207_v51, %v1207_v51  ;;  %v2190_v56 = vsel %vm2164_vm4, %v1207_v51, 0.0  ;;  %v2409_v57 = vmul.f32 %v1207_v51, %v1207_v51  ;;  %v1209_v58 = vpop.f32.mrb[27].mxu0  ;;  %v1433_v60 = vpop.f32.mrb[27].mxu1 }
 0x148   : > { %2120 = vst.msk [vmem:[%s4061_s29 + $0x110] sm:$0xf] %vm2051_vm3, %v3303_v47  ;;  %v2532_v61 = vadd.f32 %v2531_v53, %v2530_v39  ;;  %v2191_v62 = vadd.f32 %v2190_v56, %v2189_v49  ;;  %v3304_v63 = vpack.c.bf16 %v4182_v52, %v4182_v52 }
 0x149   : > { %2065 = vst.msk [vmem:[%s4061_s29 + $0x34] sm:$0xf] %vm2051_vm3, %v3248_v54  ;;  %v2533_v0 = vsel %vm2164_vm4, %v2409_v57, 0.0 }
 0x14a   : > { %v2534_v2 = vadd.f32 %v2533_v0, %v2532_v61  ;;  %2121 = vst.msk [vmem:[%s4061_s29 + $0x114] sm:$0xf] %vm2051_vm3, %v3304_v63 }
 0x14c   : > { %v1212_v3 = vpop.f32.mrb[28].mxu0  ;;  %v4197_v4 = vpop.f32.mrb[28].mxu1 }
 0x14d   : > { %v3249_v5 = vpack.c.bf16 %v1212_v3, %v1212_v3  ;;  %v2192_v6 = vsel %vm2164_vm4, %v1212_v3, 0.0  ;;  %v2410_v7 = vmul.f32 %v1212_v3, %v1212_v3  ;;  %v1214_v9 = vpop.f32.mrb[29].mxu0  ;;  %v3305_v10 = vpack.c.bf16 %v4197_v4, %v4197_v4  ;;  %v1438_v11 = vpop.f32.mrb[29].mxu1 }
 0x14e   : > { %v2193_v12 = vadd.f32 %v2192_v6, %v2191_v62  ;;  %v1215_v13 = vpop.f32.mrb[30].mxu0  ;;  %v4202_v14 = vpop.f32.mrb[30].mxu1 }
 0x14f   : > { %2066 = vst.msk [vmem:[%s4061_s29 + $0x38] sm:$0xf] %vm2051_vm3, %v3249_v5  ;;  %v2535_v16 = vsel %vm2164_vm4, %v2410_v7, 0.0  ;;  %v3250_v18 = vpack.c.bf16 %v1215_v13, %v1215_v13  ;;  %v2194_v19 = vsel %vm2164_vm4, %v1215_v13, 0.0  ;;  %v2411_v20 = vmul.f32 %v1215_v13, %v1215_v13  ;;  %v1217_v21 = vpop.f32.mrb[31].mxu0  ;;  %v1441_v22 = vpop.f32.mrb[31].mxu1 }
 0x150   : > { %2122 = vst.msk [vmem:[%s4061_s29 + $0x118] sm:$0xf] %vm2051_vm3, %v3305_v10  ;;  %v2536_v23 = vadd.f32 %v2535_v16, %v2534_v2  ;;  %v2195_v24 = vadd.f32 %v2194_v19, %v2193_v12  ;;  %v3306_v26 = vpack.c.bf16 %v4202_v14, %v4202_v14 }
 0x151   : > { %2067 = vst.msk [vmem:[%s4061_s29 + $0x3c] sm:$0xf] %vm2051_vm3, %v3250_v18  ;;  %v2537_v27 = vsel %vm2164_vm4, %v2411_v20, 0.0 }
 0x152   : > { %v2538_v29 = vadd.f32 %v2537_v27, %v2536_v23  ;;  %2123 = vst.msk [vmem:[%s4061_s29 + $0x11c] sm:$0xf] %vm2051_vm3, %v3306_v26 }
 0x154   : > { %v1220_v30 = vpop.f32.mrb[32].mxu0  ;;  %v4217_v32 = vpop.f32.mrb[32].mxu1 }
 0x155   : > { %v3251_v33 = vpack.c.bf16 %v1220_v30, %v1220_v30  ;;  %v2196_v34 = vsel %vm2164_vm4, %v1220_v30, 0.0  ;;  %v2412_v35 = vmul.f32 %v1220_v30, %v1220_v30  ;;  %v1222_v36 = vpop.f32.mrb[33].mxu0  ;;  %v3307_v38 = vpack.c.bf16 %v4217_v32, %v4217_v32  ;;  %v1446_v39 = vpop.f32.mrb[33].mxu1 }
 0x156   : > { %v2197_v40 = vadd.f32 %v2196_v34, %v2195_v24  ;;  %v1223_v43 = vpop.f32.mrb[34].mxu0  ;;  %v4222_v44 = vpop.f32.mrb[34].mxu1 }
 0x157   : > { %2068 = vst.msk [vmem:[%s4061_s29 + $0x40] sm:$0xf] %vm2051_vm3, %v3251_v33  ;;  %v2539_v45 = vsel %vm2164_vm4, %v2412_v35, 0.0  ;;  %v3252_v46 = vpack.c.bf16 %v1223_v43, %v1223_v43  ;;  %v2198_v47 = vsel %vm2164_vm4, %v1223_v43, 0.0  ;;  %v2413_v48 = vmul.f32 %v1223_v43, %v1223_v43  ;;  %v1225_v49 = vpop.f32.mrb[35].mxu0  ;;  %v1449_v51 = vpop.f32.mrb[35].mxu1 }
 0x158   : > { %2124 = vst.msk [vmem:[%s4061_s29 + $0x120] sm:$0xf] %vm2051_vm3, %v3307_v38  ;;  %v2540_v53 = vadd.f32 %v2539_v45, %v2538_v29  ;;  %v2199_v54 = vadd.f32 %v2198_v47, %v2197_v40  ;;  %v3308_v56 = vpack.c.bf16 %v4222_v44, %v4222_v44 }
 0x159   : > { %2069 = vst.msk [vmem:[%s4061_s29 + $0x44] sm:$0xf] %vm2051_vm3, %v3252_v46  ;;  %v2541_v57 = vsel %vm2164_vm4, %v2413_v48, 0.0 }
 0x15a   : > { %v2542_v58 = vadd.f32 %v2541_v57, %v2540_v53  ;;  %2125 = vst.msk [vmem:[%s4061_s29 + $0x124] sm:$0xf] %vm2051_vm3, %v3308_v56 }
 0x15c   : > { %v1228_v60 = vpop.f32.mrb[36].mxu0  ;;  %v4237_v61 = vpop.f32.mrb[36].mxu1 }
 0x15d   : > { %v3253_v62 = vpack.c.bf16 %v1228_v60, %v1228_v60  ;;  %v2200_v63 = vsel %vm2164_vm4, %v1228_v60, 0.0  ;;  %v2414_v0 = vmul.f32 %v1228_v60, %v1228_v60  ;;  %v1230_v2 = vpop.f32.mrb[37].mxu0  ;;  %v3309_v3 = vpack.c.bf16 %v4237_v61, %v4237_v61  ;;  %v1454_v5 = vpop.f32.mrb[37].mxu1 }
 0x15e   : > { %v2201_v6 = vadd.f32 %v2200_v63, %v2199_v54  ;;  %v1231_v7 = vpop.f32.mrb[38].mxu0  ;;  %v4242_v9 = vpop.f32.mrb[38].mxu1 }
 0x15f   : > { %2070 = vst.msk [vmem:[%s4061_s29 + $0x48] sm:$0xf] %vm2051_vm3, %v3253_v62  ;;  %v2543_v10 = vsel %vm2164_vm4, %v2414_v0, 0.0  ;;  %v3254_v11 = vpack.c.bf16 %v1231_v7, %v1231_v7  ;;  %v2202_v12 = vsel %vm2164_vm4, %v1231_v7, 0.0  ;;  %v2415_v13 = vmul.f32 %v1231_v7, %v1231_v7  ;;  %v1233_v16 = vpop.f32.mrb[39].mxu0  ;;  %v1457_v18 = vpop.f32.mrb[39].mxu1 }
 0x160   : > { %2126 = vst.msk [vmem:[%s4061_s29 + $0x128] sm:$0xf] %vm2051_vm3, %v3309_v3  ;;  %v2544_v19 = vadd.f32 %v2543_v10, %v2542_v58  ;;  %v2203_v20 = vadd.f32 %v2202_v12, %v2201_v6  ;;  %v3310_v21 = vpack.c.bf16 %v4242_v9, %v4242_v9 }
 0x161   : > { %2071 = vst.msk [vmem:[%s4061_s29 + $0x4c] sm:$0xf] %vm2051_vm3, %v3254_v11  ;;  %v2545_v22 = vsel %vm2164_vm4, %v2415_v13, 0.0 }
 0x162   : > { %v2546_v23 = vadd.f32 %v2545_v22, %v2544_v19  ;;  %2127 = vst.msk [vmem:[%s4061_s29 + $0x12c] sm:$0xf] %vm2051_vm3, %v3310_v21 }
 0x164   : > { %v1236_v24 = vpop.f32.mrb[40].mxu0  ;;  %v4257_v26 = vpop.f32.mrb[40].mxu1 }
 0x165   : > { %v3255_v27 = vpack.c.bf16 %v1236_v24, %v1236_v24  ;;  %v2204_v29 = vsel %vm2164_vm4, %v1236_v24, 0.0  ;;  %v2416_v30 = vmul.f32 %v1236_v24, %v1236_v24  ;;  %v1238_v33 = vpop.f32.mrb[41].mxu0  ;;  %v3311_v34 = vpack.c.bf16 %v4257_v26, %v4257_v26  ;;  %v1462_v35 = vpop.f32.mrb[41].mxu1 }
 0x166   : > { %v2205_v36 = vadd.f32 %v2204_v29, %v2203_v20  ;;  %v1239_v38 = vpop.f32.mrb[42].mxu0  ;;  %v4262_v39 = vpop.f32.mrb[42].mxu1 }
 0x167   : > { %2072 = vst.msk [vmem:[%s4061_s29 + $0x50] sm:$0xf] %vm2051_vm3, %v3255_v27  ;;  %v2547_v40 = vsel %vm2164_vm4, %v2416_v30, 0.0  ;;  %v3256_v43 = vpack.c.bf16 %v1239_v38, %v1239_v38  ;;  %v2206_v45 = vsel %vm2164_vm4, %v1239_v38, 0.0  ;;  %v2417_v46 = vmul.f32 %v1239_v38, %v1239_v38  ;;  %v1241_v47 = vpop.f32.mrb[43].mxu0  ;;  %v1465_v48 = vpop.f32.mrb[43].mxu1 }
 0x168   : > { %2128 = vst.msk [vmem:[%s4061_s29 + $0x130] sm:$0xf] %vm2051_vm3, %v3311_v34  ;;  %v2548_v49 = vadd.f32 %v2547_v40, %v2546_v23  ;;  %v2207_v51 = vadd.f32 %v2206_v45, %v2205_v36  ;;  %v3312_v53 = vpack.c.bf16 %v4262_v39, %v4262_v39 }
 0x169   : > { %2073 = vst.msk [vmem:[%s4061_s29 + $0x54] sm:$0xf] %vm2051_vm3, %v3256_v43  ;;  %v2549_v54 = vsel %vm2164_vm4, %v2417_v46, 0.0 }
 0x16a   : > { %v2550_v56 = vadd.f32 %v2549_v54, %v2548_v49  ;;  %2129 = vst.msk [vmem:[%s4061_s29 + $0x134] sm:$0xf] %vm2051_vm3, %v3312_v53 }
 0x16c   : > { %v1244_v57 = vpop.f32.mrb[44].mxu0  ;;  %v4277_v58 = vpop.f32.mrb[44].mxu1 }
 0x16d   : > { %v3257_v60 = vpack.c.bf16 %v1244_v57, %v1244_v57  ;;  %v2208_v62 = vsel %vm2164_vm4, %v1244_v57, 0.0  ;;  %v2418_v63 = vmul.f32 %v1244_v57, %v1244_v57  ;;  %v1246_v0 = vpop.f32.mrb[45].mxu0  ;;  %v3313_v2 = vpack.c.bf16 %v4277_v58, %v4277_v58  ;;  %v1470_v3 = vpop.f32.mrb[45].mxu1 }
 0x16e   : > { %v2209_v5 = vadd.f32 %v2208_v62, %v2207_v51  ;;  %v1247_v6 = vpop.f32.mrb[46].mxu0  ;;  %v4282_v7 = vpop.f32.mrb[46].mxu1 }
 0x16f   : > { %2074 = vst.msk [vmem:[%s4061_s29 + $0x58] sm:$0xf] %vm2051_vm3, %v3257_v60  ;;  %v2551_v10 = vsel %vm2164_vm4, %v2418_v63, 0.0  ;;  %v3258_v11 = vpack.c.bf16 %v1247_v6, %v1247_v6  ;;  %v2210_v12 = vsel %vm2164_vm4, %v1247_v6, 0.0  ;;  %v2419_v13 = vmul.f32 %v1247_v6, %v1247_v6  ;;  %v1249_v16 = vpop.f32.mrb[47].mxu0  ;;  %v1473_v18 = vpop.f32.mrb[47].mxu1 }
 0x170   : > { %2130 = vst.msk [vmem:[%s4061_s29 + $0x138] sm:$0xf] %vm2051_vm3, %v3313_v2  ;;  %v2552_v19 = vadd.f32 %v2551_v10, %v2550_v56  ;;  %v2211_v20 = vadd.f32 %v2210_v12, %v2209_v5  ;;  %v3314_v21 = vpack.c.bf16 %v4282_v7, %v4282_v7 }
 0x171   : > { %2075 = vst.msk [vmem:[%s4061_s29 + $0x5c] sm:$0xf] %vm2051_vm3, %v3258_v11  ;;  %v2553_v22 = vsel %vm2164_vm4, %v2419_v13, 0.0 }
 0x172   : > { %v2554_v23 = vadd.f32 %v2553_v22, %v2552_v19  ;;  %2131 = vst.msk [vmem:[%s4061_s29 + $0x13c] sm:$0xf] %vm2051_vm3, %v3314_v21 }
 0x174   : > { %v1252_v24 = vpop.f32.mrb[48].mxu0  ;;  %v4297_v27 = vpop.f32.mrb[48].mxu1 }
 0x175   : > { %v3259_v29 = vpack.c.bf16 %v1252_v24, %v1252_v24  ;;  %v2212_v30 = vsel %vm2164_vm4, %v1252_v24, 0.0  ;;  %v2420_v33 = vmul.f32 %v1252_v24, %v1252_v24  ;;  %v1254_v34 = vpop.f32.mrb[49].mxu0  ;;  %v3315_v35 = vpack.c.bf16 %v4297_v27, %v4297_v27  ;;  %v1478_v36 = vpop.f32.mrb[49].mxu1 }
 0x176   : > { %v2213_v38 = vadd.f32 %v2212_v30, %v2211_v20  ;;  %v1255_v40 = vpop.f32.mrb[50].mxu0  ;;  %v4302_v43 = vpop.f32.mrb[50].mxu1 }
 0x177   : > { %2076 = vst.msk [vmem:[%s4061_s29 + $0x60] sm:$0xf] %vm2051_vm3, %v3259_v29  ;;  %v2555_v45 = vsel %vm2164_vm4, %v2420_v33, 0.0  ;;  %v3260_v46 = vpack.c.bf16 %v1255_v40, %v1255_v40  ;;  %v2214_v47 = vsel %vm2164_vm4, %v1255_v40, 0.0  ;;  %v2421_v48 = vmul.f32 %v1255_v40, %v1255_v40  ;;  %v1257_v49 = vpop.f32.mrb[51].mxu0  ;;  %v1481_v51 = vpop.f32.mrb[51].mxu1 }
 0x178   : > { %2132 = vst.msk [vmem:[%s4061_s29 + $0x140] sm:$0xf] %vm2051_vm3, %v3315_v35  ;;  %v2556_v53 = vadd.f32 %v2555_v45, %v2554_v23  ;;  %v2215_v54 = vadd.f32 %v2214_v47, %v2213_v38  ;;  %v3316_v56 = vpack.c.bf16 %v4302_v43, %v4302_v43 }
 0x179   : > { %2077 = vst.msk [vmem:[%s4061_s29 + $0x64] sm:$0xf] %vm2051_vm3, %v3260_v46  ;;  %v2557_v57 = vsel %vm2164_vm4, %v2421_v48, 0.0 }
 0x17a   : > { %v2558_v60 = vadd.f32 %v2557_v57, %v2556_v53  ;;  %2133 = vst.msk [vmem:[%s4061_s29 + $0x144] sm:$0xf] %vm2051_vm3, %v3316_v56 }
 0x17c   : > { %v1260_v62 = vpop.f32.mrb[52].mxu0  ;;  %v4317_v63 = vpop.f32.mrb[52].mxu1 }
 0x17d   : > { %v3261_v0 = vpack.c.bf16 %v1260_v62, %v1260_v62  ;;  %v2216_v2 = vsel %vm2164_vm4, %v1260_v62, 0.0  ;;  %v2422_v3 = vmul.f32 %v1260_v62, %v1260_v62  ;;  %v1262_v5 = vpop.f32.mrb[53].mxu0  ;;  %v3317_v6 = vpack.c.bf16 %v4317_v63, %v4317_v63  ;;  %v1486_v10 = vpop.f32.mrb[53].mxu1 }
 0x17e   : > { %v2217_v11 = vadd.f32 %v2216_v2, %v2215_v54  ;;  %v1263_v12 = vpop.f32.mrb[54].mxu0  ;;  %v4322_v13 = vpop.f32.mrb[54].mxu1 }
 0x17f   : > { %2078 = vst.msk [vmem:[%s4061_s29 + $0x68] sm:$0xf] %vm2051_vm3, %v3261_v0  ;;  %v2559_v16 = vsel %vm2164_vm4, %v2422_v3, 0.0  ;;  %v3262_v18 = vpack.c.bf16 %v1263_v12, %v1263_v12  ;;  %v2218_v19 = vsel %vm2164_vm4, %v1263_v12, 0.0  ;;  %v2423_v20 = vmul.f32 %v1263_v12, %v1263_v12  ;;  %v1265_v21 = vpop.f32.mrb[55].mxu0  ;;  %v1489_v22 = vpop.f32.mrb[55].mxu1 }
 0x180   : > { %2134 = vst.msk [vmem:[%s4061_s29 + $0x148] sm:$0xf] %vm2051_vm3, %v3317_v6  ;;  %v2560_v23 = vadd.f32 %v2559_v16, %v2558_v60  ;;  %v2219_v24 = vadd.f32 %v2218_v19, %v2217_v11  ;;  %v3318_v29 = vpack.c.bf16 %v4322_v13, %v4322_v13 }
 0x181   : > { %2079 = vst.msk [vmem:[%s4061_s29 + $0x6c] sm:$0xf] %vm2051_vm3, %v3262_v18  ;;  %v2561_v30 = vsel %vm2164_vm4, %v2423_v20, 0.0 }
 0x182   : > { %v2562_v33 = vadd.f32 %v2561_v30, %v2560_v23  ;;  %2135 = vst.msk [vmem:[%s4061_s29 + $0x14c] sm:$0xf] %vm2051_vm3, %v3318_v29 }
 0x184   : > { %v1268_v34 = vpop.f32.mrb[56].mxu0  ;;  %v4337_v35 = vpop.f32.mrb[56].mxu1 }
 0x185   : > { %v3263_v36 = vpack.c.bf16 %v1268_v34, %v1268_v34  ;;  %v2220_v38 = vsel %vm2164_vm4, %v1268_v34, 0.0  ;;  %v2424_v40 = vmul.f32 %v1268_v34, %v1268_v34  ;;  %v1270_v45 = vpop.f32.mrb[57].mxu0  ;;  %v3319_v46 = vpack.c.bf16 %v4337_v35, %v4337_v35  ;;  %v1494_v47 = vpop.f32.mrb[57].mxu1 }
 0x186   : > { %v2221_v48 = vadd.f32 %v2220_v38, %v2219_v24  ;;  %v1271_v49 = vpop.f32.mrb[58].mxu0  ;;  %v4342_v51 = vpop.f32.mrb[58].mxu1 }
 0x187   : > { %2080 = vst.msk [vmem:[%s4061_s29 + $0x70] sm:$0xf] %vm2051_vm3, %v3263_v36  ;;  %v2563_v53 = vsel %vm2164_vm4, %v2424_v40, 0.0  ;;  %v3264_v54 = vpack.c.bf16 %v1271_v49, %v1271_v49  ;;  %v2222_v56 = vsel %vm2164_vm4, %v1271_v49, 0.0  ;;  %v2425_v57 = vmul.f32 %v1271_v49, %v1271_v49  ;;  %v1273_v60 = vpop.f32.mrb[59].mxu0  ;;  %v1497_v62 = vpop.f32.mrb[59].mxu1 }
 0x188   : > { %2136 = vst.msk [vmem:[%s4061_s29 + $0x150] sm:$0xf] %vm2051_vm3, %v3319_v46  ;;  %v2564_v0 = vadd.f32 %v2563_v53, %v2562_v33  ;;  %v2223_v2 = vadd.f32 %v2222_v56, %v2221_v48  ;;  %v3320_v3 = vpack.c.bf16 %v4342_v51, %v4342_v51 }
 0x189   : > { %2081 = vst.msk [vmem:[%s4061_s29 + $0x74] sm:$0xf] %vm2051_vm3, %v3264_v54  ;;  %v2565_v5 = vsel %vm2164_vm4, %v2425_v57, 0.0 }
 0x18a   : > { %v2566_v6 = vadd.f32 %v2565_v5, %v2564_v0  ;;  %2137 = vst.msk [vmem:[%s4061_s29 + $0x154] sm:$0xf] %vm2051_vm3, %v3320_v3 }
 0x18c   : > { %v1276_v10 = vpop.f32.mrb[60].mxu0  ;;  %v4357_v11 = vpop.f32.mrb[60].mxu1 }
 0x18d   : > { %v3265_v12 = vpack.c.bf16 %v1276_v10, %v1276_v10  ;;  %v2224_v16 = vsel %vm2164_vm4, %v1276_v10, 0.0  ;;  %v2426_v18 = vmul.f32 %v1276_v10, %v1276_v10  ;;  %v1278_v19 = vpop.f32.mrb[61].mxu0  ;;  %v3321_v20 = vpack.c.bf16 %v4357_v11, %v4357_v11  ;;  %v1502_v21 = vpop.f32.mrb[61].mxu1 }
 0x18e   : > { %v2225_v22 = vadd.f32 %v2224_v16, %v2223_v2  ;;  %v1279_v23 = vpop.f32.mrb[62].mxu0  ;;  %v4362_v24 = vpop.f32.mrb[62].mxu1 }
 0x18f   : > { %2082 = vst.msk [vmem:[%s4061_s29 + $0x78] sm:$0xf] %vm2051_vm3, %v3265_v12  ;;  %v2567_v29 = vsel %vm2164_vm4, %v2426_v18, 0.0  ;;  %v3266_v30 = vpack.c.bf16 %v1279_v23, %v1279_v23  ;;  %v2226_v33 = vsel %vm2164_vm4, %v1279_v23, 0.0  ;;  %v2427_v34 = vmul.f32 %v1279_v23, %v1279_v23  ;;  %v1281_v36 = vpop.f32.mrb[63].mxu0  ;;  %v1505_v38 = vpop.f32.mrb[63].mxu1 }
 0x190   : > { %2138 = vst.msk [vmem:[%s4061_s29 + $0x158] sm:$0xf] %vm2051_vm3, %v3321_v20  ;;  %v2568_v40 = vadd.f32 %v2567_v29, %v2566_v6  ;;  %v2227_v45 = vadd.f32 %v2226_v33, %v2225_v22  ;;  %v3322_v46 = vpack.c.bf16 %v4362_v24, %v4362_v24 }
 0x191   : > { %2083 = vst.msk [vmem:[%s4061_s29 + $0x7c] sm:$0xf] %vm2051_vm3, %v3266_v30  ;;  %v2569_v47 = vsel %vm2164_vm4, %v2427_v34, 0.0 }
 0x192   : > { %v2570_v48 = vadd.f32 %v2569_v47, %v2568_v40  ;;  %2139 = vst.msk [vmem:[%s4061_s29 + $0x15c] sm:$0xf] %vm2051_vm3, %v3322_v46 }
 0x194   : > { %v1284_v49 = vpop.f32.mrb[64].mxu0  ;;  %v4377_v53 = vpop.f32.mrb[64].mxu1 }
 0x195   : > { %v3267_v54 = vpack.c.bf16 %v1284_v49, %v1284_v49  ;;  %v2228_v56 = vsel %vm2164_vm4, %v1284_v49, 0.0  ;;  %v2428_v57 = vmul.f32 %v1284_v49, %v1284_v49  ;;  %v1286_v60 = vpop.f32.mrb[65].mxu0  ;;  %v3323_v62 = vpack.c.bf16 %v4377_v53, %v4377_v53  ;;  %v1510_v0 = vpop.f32.mrb[65].mxu1 }
 0x196   : > { %v2229_v2 = vadd.f32 %v2228_v56, %v2227_v45  ;;  %v1287_v3 = vpop.f32.mrb[66].mxu0  ;;  %v4382_v5 = vpop.f32.mrb[66].mxu1 }
 0x197   : > { %2084 = vst.msk [vmem:[%s4061_s29 + $0x80] sm:$0xf] %vm2051_vm3, %v3267_v54  ;;  %v2571_v6 = vsel %vm2164_vm4, %v2428_v57, 0.0  ;;  %v3268_v10 = vpack.c.bf16 %v1287_v3, %v1287_v3  ;;  %v2230_v12 = vsel %vm2164_vm4, %v1287_v3, 0.0  ;;  %v2429_v16 = vmul.f32 %v1287_v3, %v1287_v3  ;;  %v1289_v18 = vpop.f32.mrb[67].mxu0  ;;  %v1513_v19 = vpop.f32.mrb[67].mxu1 }
 0x198   : > { %2140 = vst.msk [vmem:[%s4061_s29 + $0x160] sm:$0xf] %vm2051_vm3, %v3323_v62  ;;  %v2572_v20 = vadd.f32 %v2571_v6, %v2570_v48  ;;  %v2231_v21 = vadd.f32 %v2230_v12, %v2229_v2  ;;  %v3324_v22 = vpack.c.bf16 %v4382_v5, %v4382_v5 }
 0x199   : > { %2085 = vst.msk [vmem:[%s4061_s29 + $0x84] sm:$0xf] %vm2051_vm3, %v3268_v10  ;;  %v2573_v23 = vsel %vm2164_vm4, %v2429_v16, 0.0 }
 0x19a   : > { %v2574_v29 = vadd.f32 %v2573_v23, %v2572_v20  ;;  %2141 = vst.msk [vmem:[%s4061_s29 + $0x164] sm:$0xf] %vm2051_vm3, %v3324_v22 }
 0x19c   : > { %v1292_v30 = vpop.f32.mrb[68].mxu0  ;;  %v4397_v33 = vpop.f32.mrb[68].mxu1 }
 0x19d   : > { %v3269_v34 = vpack.c.bf16 %v1292_v30, %v1292_v30  ;;  %v2232_v36 = vsel %vm2164_vm4, %v1292_v30, 0.0  ;;  %v2430_v38 = vmul.f32 %v1292_v30, %v1292_v30  ;;  %v1294_v40 = vpop.f32.mrb[69].mxu0  ;;  %v3325_v45 = vpack.c.bf16 %v4397_v33, %v4397_v33  ;;  %v1518_v46 = vpop.f32.mrb[69].mxu1 }
 0x19e   : > { %v2233_v47 = vadd.f32 %v2232_v36, %v2231_v21  ;;  %v1295_v48 = vpop.f32.mrb[70].mxu0  ;;  %v4402_v49 = vpop.f32.mrb[70].mxu1 }
 0x19f   : > { %2086 = vst.msk [vmem:[%s4061_s29 + $0x88] sm:$0xf] %vm2051_vm3, %v3269_v34  ;;  %v2575_v54 = vsel %vm2164_vm4, %v2430_v38, 0.0  ;;  %v3270_v56 = vpack.c.bf16 %v1295_v48, %v1295_v48  ;;  %v2234_v57 = vsel %vm2164_vm4, %v1295_v48, 0.0  ;;  %v2431_v60 = vmul.f32 %v1295_v48, %v1295_v48  ;;  %v1297_v62 = vpop.f32.mrb[71].mxu0  ;;  %v1521_v0 = vpop.f32.mrb[71].mxu1 }
 0x1a0   : > { %2142 = vst.msk [vmem:[%s4061_s29 + $0x168] sm:$0xf] %vm2051_vm3, %v3325_v45  ;;  %v2576_v2 = vadd.f32 %v2575_v54, %v2574_v29  ;;  %v2235_v3 = vadd.f32 %v2234_v57, %v2233_v47  ;;  %v3326_v6 = vpack.c.bf16 %v4402_v49, %v4402_v49 }
 0x1a1   : > { %2087 = vst.msk [vmem:[%s4061_s29 + $0x8c] sm:$0xf] %vm2051_vm3, %v3270_v56  ;;  %v2577_v10 = vsel %vm2164_vm4, %v2431_v60, 0.0 }
 0x1a2   : > { %v2578_v12 = vadd.f32 %v2577_v10, %v2576_v2  ;;  %2143 = vst.msk [vmem:[%s4061_s29 + $0x16c] sm:$0xf] %vm2051_vm3, %v3326_v6 }
 0x1a4   : > { %v1300_v16 = vpop.f32.mrb[72].mxu0  ;;  %v4417_v18 = vpop.f32.mrb[72].mxu1 }
 0x1a5   : > { %v3271_v19 = vpack.c.bf16 %v1300_v16, %v1300_v16  ;;  %v2236_v20 = vsel %vm2164_vm4, %v1300_v16, 0.0  ;;  %v2432_v21 = vmul.f32 %v1300_v16, %v1300_v16  ;;  %v1302_v22 = vpop.f32.mrb[73].mxu0  ;;  %v3327_v23 = vpack.c.bf16 %v4417_v18, %v4417_v18  ;;  %v1526_v29 = vpop.f32.mrb[73].mxu1 }
 0x1a6   : > { %v2237_v30 = vadd.f32 %v2236_v20, %v2235_v3  ;;  %v1303_v34 = vpop.f32.mrb[74].mxu0  ;;  %v4422_v36 = vpop.f32.mrb[74].mxu1 }
 0x1a7   : > { %2088 = vst.msk [vmem:[%s4061_s29 + $0x90] sm:$0xf] %vm2051_vm3, %v3271_v19  ;;  %v2579_v38 = vsel %vm2164_vm4, %v2432_v21, 0.0  ;;  %v3272_v40 = vpack.c.bf16 %v1303_v34, %v1303_v34  ;;  %v2238_v45 = vsel %vm2164_vm4, %v1303_v34, 0.0  ;;  %v2433_v46 = vmul.f32 %v1303_v34, %v1303_v34  ;;  %v1305_v47 = vpop.f32.mrb[75].mxu0  ;;  %v1529_v48 = vpop.f32.mrb[75].mxu1 }
 0x1a8   : > { %2144 = vst.msk [vmem:[%s4061_s29 + $0x170] sm:$0xf] %vm2051_vm3, %v3327_v23  ;;  %v2580_v54 = vadd.f32 %v2579_v38, %v2578_v12  ;;  %v2239_v56 = vadd.f32 %v2238_v45, %v2237_v30  ;;  %v3328_v57 = vpack.c.bf16 %v4422_v36, %v4422_v36 }
 0x1a9   : > { %2089 = vst.msk [vmem:[%s4061_s29 + $0x94] sm:$0xf] %vm2051_vm3, %v3272_v40  ;;  %v2581_v60 = vsel %vm2164_vm4, %v2433_v46, 0.0 }
 0x1aa   : > { %v2582_v62 = vadd.f32 %v2581_v60, %v2580_v54  ;;  %2145 = vst.msk [vmem:[%s4061_s29 + $0x174] sm:$0xf] %vm2051_vm3, %v3328_v57 }
 0x1ac   : > { %v1308_v0 = vpop.f32.mrb[76].mxu0  ;;  %v4437_v2 = vpop.f32.mrb[76].mxu1 }
 0x1ad   : > { %v3273_v3 = vpack.c.bf16 %v1308_v0, %v1308_v0  ;;  %v2240_v6 = vsel %vm2164_vm4, %v1308_v0, 0.0  ;;  %v2434_v10 = vmul.f32 %v1308_v0, %v1308_v0  ;;  %v1310_v12 = vpop.f32.mrb[77].mxu0  ;;  %v3329_v16 = vpack.c.bf16 %v4437_v2, %v4437_v2  ;;  %v1534_v19 = vpop.f32.mrb[77].mxu1 }
 0x1ae   : > { %v2241_v20 = vadd.f32 %v2240_v6, %v2239_v56  ;;  %v1311_v21 = vpop.f32.mrb[78].mxu0  ;;  %v4442_v22 = vpop.f32.mrb[78].mxu1 }
 0x1af   : > { %2090 = vst.msk [vmem:[%s4061_s29 + $0x98] sm:$0xf] %vm2051_vm3, %v3273_v3  ;;  %v2583_v23 = vsel %vm2164_vm4, %v2434_v10, 0.0  ;;  %v3274_v29 = vpack.c.bf16 %v1311_v21, %v1311_v21  ;;  %v2242_v30 = vsel %vm2164_vm4, %v1311_v21, 0.0  ;;  %v2435_v34 = vmul.f32 %v1311_v21, %v1311_v21  ;;  %v1313_v38 = vpop.f32.mrb[79].mxu0  ;;  %v1537_v40 = vpop.f32.mrb[79].mxu1 }
 0x1b0   : > { %2146 = vst.msk [vmem:[%s4061_s29 + $0x178] sm:$0xf] %vm2051_vm3, %v3329_v16  ;;  %v2584_v45 = vadd.f32 %v2583_v23, %v2582_v62  ;;  %v2243_v46 = vadd.f32 %v2242_v30, %v2241_v20  ;;  %v3330_v47 = vpack.c.bf16 %v4442_v22, %v4442_v22 }
 0x1b1   : > { %2091 = vst.msk [vmem:[%s4061_s29 + $0x9c] sm:$0xf] %vm2051_vm3, %v3274_v29  ;;  %v2585_v48 = vsel %vm2164_vm4, %v2435_v34, 0.0 }
 0x1b2   : > { %v2586_v54 = vadd.f32 %v2585_v48, %v2584_v45  ;;  %2147 = vst.msk [vmem:[%s4061_s29 + $0x17c] sm:$0xf] %vm2051_vm3, %v3330_v47 }
 0x1b4   : > { %v1316_v56 = vpop.f32.mrb[80].mxu0  ;;  %v4457_v57 = vpop.f32.mrb[80].mxu1 }
 0x1b5   : > { %v3275_v60 = vpack.c.bf16 %v1316_v56, %v1316_v56  ;;  %v2244_v0 = vsel %vm2164_vm4, %v1316_v56, 0.0  ;;  %v2436_v62 = vmul.f32 %v1316_v56, %v1316_v56  ;;  %v1318_v3 = vpop.f32.mrb[81].mxu0  ;;  %v3331_v6 = vpack.c.bf16 %v4457_v57, %v4457_v57  ;;  %v1542_v10 = vpop.f32.mrb[81].mxu1 }
 0x1b6   : > { %v2245_v12 = vadd.f32 %v2244_v0, %v2243_v46  ;;  %v1319_v16 = vpop.f32.mrb[82].mxu0  ;;  %v4462_v19 = vpop.f32.mrb[82].mxu1 }
 0x1b7   : > { %2092 = vst.msk [vmem:[%s4061_s29 + $0xa0] sm:$0xf] %vm2051_vm3, %v3275_v60  ;;  %v2587_v20 = vsel %vm2164_vm4, %v2436_v62, 0.0  ;;  %v3276_v21 = vpack.c.bf16 %v1319_v16, %v1319_v16  ;;  %v2246_v23 = vsel %vm2164_vm4, %v1319_v16, 0.0  ;;  %v2437_v29 = vmul.f32 %v1319_v16, %v1319_v16  ;;  %v1321_v30 = vpop.f32.mrb[83].mxu0  ;;  %v1545_v34 = vpop.f32.mrb[83].mxu1 }
 0x1b8   : > { %2148 = vst.msk [vmem:[%s4061_s29 + $0x180] sm:$0xf] %vm2051_vm3, %v3331_v6  ;;  %v2588_v38 = vadd.f32 %v2587_v20, %v2586_v54  ;;  %v2247_v40 = vadd.f32 %v2246_v23, %v2245_v12  ;;  %v3332_v45 = vpack.c.bf16 %v4462_v19, %v4462_v19 }
 0x1b9   : > { %2093 = vst.msk [vmem:[%s4061_s29 + $0xa4] sm:$0xf] %vm2051_vm3, %v3276_v21  ;;  %v2589_v46 = vsel %vm2164_vm4, %v2437_v29, 0.0 }
 0x1ba   : > { %v2590_v47 = vadd.f32 %v2589_v46, %v2588_v38  ;;  %2149 = vst.msk [vmem:[%s4061_s29 + $0x184] sm:$0xf] %vm2051_vm3, %v3332_v45 }
 0x1bc   : > { %v1324_v48 = vpop.f32.mrb[84].mxu0  ;;  %v4477_v56 = vpop.f32.mrb[84].mxu1 }
 0x1bd   : > { %v3277_v60 = vpack.c.bf16 %v1324_v48, %v1324_v48  ;;  %v2248_v0 = vsel %vm2164_vm4, %v1324_v48, 0.0  ;;  %v2438_v54 = vmul.f32 %v1324_v48, %v1324_v48  ;;  %v1326_v62 = vpop.f32.mrb[85].mxu0  ;;  %v3333_v3 = vpack.c.bf16 %v4477_v56, %v4477_v56  ;;  %v1550_v6 = vpop.f32.mrb[85].mxu1 }
 0x1be   : > { %v2249_v10 = vadd.f32 %v2248_v0, %v2247_v40  ;;  %v1327_v12 = vpop.f32.mrb[86].mxu0  ;;  %v4482_v16 = vpop.f32.mrb[86].mxu1 }
 0x1bf   : > { %2094 = vst.msk [vmem:[%s4061_s29 + $0xa8] sm:$0xf] %vm2051_vm3, %v3277_v60  ;;  %v2591_v20 = vsel %vm2164_vm4, %v2438_v54, 0.0  ;;  %v3278_v21 = vpack.c.bf16 %v1327_v12, %v1327_v12  ;;  %v2250_v23 = vsel %vm2164_vm4, %v1327_v12, 0.0  ;;  %v2439_v29 = vmul.f32 %v1327_v12, %v1327_v12  ;;  %v1329_v30 = vpop.f32.mrb[87].mxu0  ;;  %v1553_v34 = vpop.f32.mrb[87].mxu1 }
 0x1c0   : > { %2150 = vst.msk [vmem:[%s4061_s29 + $0x188] sm:$0xf] %vm2051_vm3, %v3333_v3  ;;  %v2592_v38 = vadd.f32 %v2591_v20, %v2590_v47  ;;  %v2251_v45 = vadd.f32 %v2250_v23, %v2249_v10  ;;  %v3334_v40 = vpack.c.bf16 %v4482_v16, %v4482_v16 }
 0x1c1   : > { %2095 = vst.msk [vmem:[%s4061_s29 + $0xac] sm:$0xf] %vm2051_vm3, %v3278_v21  ;;  %v2593_v46 = vsel %vm2164_vm4, %v2439_v29, 0.0 }
 0x1c2   : > { %v2594_v48 = vadd.f32 %v2593_v46, %v2592_v38  ;;  %2151 = vst.msk [vmem:[%s4061_s29 + $0x18c] sm:$0xf] %vm2051_vm3, %v3334_v40 }
 0x1c4   : > { %v1332_v60 = vpop.f32.mrb[88].mxu0  ;;  %v4497_v0 = vpop.f32.mrb[88].mxu1 }
 0x1c5   : > { %v3279_v54 = vpack.c.bf16 %v1332_v60, %v1332_v60  ;;  %v2252_v62 = vsel %vm2164_vm4, %v1332_v60, 0.0  ;;  %v2440_v47 = vmul.f32 %v1332_v60, %v1332_v60  ;;  %v1334_v3 = vpop.f32.mrb[89].mxu0  ;;  %v3335_v6 = vpack.c.bf16 %v4497_v0, %v4497_v0  ;;  %v1558_v10 = vpop.f32.mrb[89].mxu1 }
 0x1c6   : > { %v2253_v12 = vadd.f32 %v2252_v62, %v2251_v45  ;;  %v1335_v20 = vpop.f32.mrb[90].mxu0  ;;  %v4502_v21 = vpop.f32.mrb[90].mxu1 }
 0x1c7   : > { %2096 = vst.msk [vmem:[%s4061_s29 + $0xb0] sm:$0xf] %vm2051_vm3, %v3279_v54  ;;  %v2595_v23 = vsel %vm2164_vm4, %v2440_v47, 0.0  ;;  %v3280_v29 = vpack.c.bf16 %v1335_v20, %v1335_v20  ;;  %v2254_v30 = vsel %vm2164_vm4, %v1335_v20, 0.0  ;;  %v2441_v34 = vmul.f32 %v1335_v20, %v1335_v20  ;;  %v1337_v38 = vpop.f32.mrb[91].mxu0  ;;  %v1561_v40 = vpop.f32.mrb[91].mxu1 }
 0x1c8   : > { %2152 = vst.msk [vmem:[%s4061_s29 + $0x190] sm:$0xf] %vm2051_vm3, %v3335_v6  ;;  %v2596_v46 = vadd.f32 %v2595_v23, %v2594_v48  ;;  %v2255_v60 = vadd.f32 %v2254_v30, %v2253_v12  ;;  %v3336_v45 = vpack.c.bf16 %v4502_v21, %v4502_v21 }
 0x1c9   : > { %2097 = vst.msk [vmem:[%s4061_s29 + $0xb4] sm:$0xf] %vm2051_vm3, %v3280_v29  ;;  %v2597_v54 = vsel %vm2164_vm4, %v2441_v34, 0.0 }
 0x1ca   : > { %v2598_v62 = vadd.f32 %v2597_v54, %v2596_v46  ;;  %2153 = vst.msk [vmem:[%s4061_s29 + $0x194] sm:$0xf] %vm2051_vm3, %v3336_v45 }
 0x1cc   : > { %v1340_v47 = vpop.f32.mrb[92].mxu0  ;;  %v4517_v3 = vpop.f32.mrb[92].mxu1 }
 0x1cd   : > { %5053 = vst [vmem:[#allocation9_spill] sm:$0xff] %v4517_v3  ;;  %v3281_v10 = vpack.c.bf16 %v1340_v47, %v1340_v47  ;;  %v2256_v6 = vsel %vm2164_vm4, %v1340_v47, 0.0  ;;  %v2442_v48 = vmul.f32 %v1340_v47, %v1340_v47  ;;  %v1342_v12 = vpop.f32.mrb[93].mxu0  ;;  %v3337_v20 = vpack.c.bf16 %v4517_v3, %v4517_v3  ;;  %v1566_v23 = vpop.f32.mrb[93].mxu1 }
 0x1ce   : > { %v2257_v29 = vadd.f32 %v2256_v6, %v2255_v60  ;;  %v1343_v30 = vpop.f32.mrb[94].mxu0  ;;  %v4522_v34 = vpop.f32.mrb[94].mxu1 }
 0x1cf   : > { %5054 = vst [vmem:[#allocation10_spill] sm:$0xff] %v4522_v34  ;;  %2098 = vst.msk [vmem:[%s4061_s29 + $0xb8] sm:$0xf] %vm2051_vm3, %v3281_v10  ;;  %v2599_v38 = vsel %vm2164_vm4, %v2442_v48, 0.0  ;;  %v3282_v40 = vpack.c.bf16 %v1343_v30, %v1343_v30  ;;  %v2258_v46 = vsel %vm2164_vm4, %v1343_v30, 0.0  ;;  %v2443_v45 = vmul.f32 %v1343_v30, %v1343_v30  ;;  %v1345_v54 = vpop.f32.mrb[95].mxu0 }
 0x1d0   : > { %2154 = vst.msk [vmem:[%s4061_s29 + $0x198] sm:$0xf] %vm2051_vm3, %v3337_v20  ;;  %v1569_v47 = vpop.f32.mrb[95].mxu1  ;;  %v2600_v12 = vadd.f32 %v2599_v38, %v2598_v62  ;;  %v2259_v3 = vadd.f32 %v2258_v46, %v2257_v29  ;;  %v3338_v60 = vpack.c.bf16 %v4522_v34, %v4522_v34 }
 0x1d1   : > { %2099 = vst.msk [vmem:[%s4061_s29 + $0xbc] sm:$0xf] %vm2051_vm3, %v3282_v40  ;;  %v2601_v10 = vsel %vm2164_vm4, %v2443_v45, 0.0 }
 0x1d2   : > { %v2602_v6 = vadd.f32 %v2601_v10, %v2600_v12  ;;  %2155 = vst.msk [vmem:[%s4061_s29 + $0x19c] sm:$0xf] %vm2051_vm3, %v3338_v60 }
 0x1d4   : > { %v1348_v48 = vpop.f32.mrb[96].mxu0  ;;  %v4537_v23 = vpop.f32.mrb[96].mxu1 }
 0x1d5   : > { %5055 = vst [vmem:[#allocation11_spill] sm:$0xff] %v4537_v23  ;;  %v3283_v30 = vpack.c.bf16 %v1348_v48, %v1348_v48  ;;  %v2260_v20 = vsel %vm2164_vm4, %v1348_v48, 0.0  ;;  %v2444_v62 = vmul.f32 %v1348_v48, %v1348_v48  ;;  %v1350_v29 = vpop.f32.mrb[97].mxu0  ;;  %v3339_v38 = vpack.c.bf16 %v4537_v23, %v4537_v23  ;;  %v1574_v46 = vpop.f32.mrb[97].mxu1 }
 0x1d6   : > { %v2261_v40 = vadd.f32 %v2260_v20, %v2259_v3  ;;  %v1351_v54 = vpop.f32.mrb[98].mxu0  ;;  %v4542_v45 = vpop.f32.mrb[98].mxu1 }
 0x1d7   : > { %5056 = vst [vmem:[#allocation12_spill] sm:$0xff] %v4542_v45  ;;  %2100 = vst.msk [vmem:[%s4061_s29 + $0xc0] sm:$0xf] %vm2051_vm3, %v3283_v30  ;;  %v2603_v47 = vsel %vm2164_vm4, %v2444_v62, 0.0  ;;  %v3284_v12 = vpack.c.bf16 %v1351_v54, %v1351_v54  ;;  %v2262_v60 = vsel %vm2164_vm4, %v1351_v54, 0.0  ;;  %v2445_v10 = vmul.f32 %v1351_v54, %v1351_v54  ;;  %v1353_v48 = vpop.f32.mrb[99].mxu0 }
 0x1d8   : > { %2156 = vst.msk [vmem:[%s4061_s29 + $0x1a0] sm:$0xf] %vm2051_vm3, %v3339_v38  ;;  %v1577_v29 = vpop.f32.mrb[99].mxu1  ;;  %v2604_v23 = vadd.f32 %v2603_v47, %v2602_v6  ;;  %v2263_v34 = vadd.f32 %v2262_v60, %v2261_v40  ;;  %v3340_v3 = vpack.c.bf16 %v4542_v45, %v4542_v45 }
 0x1d9   : > { %2101 = vst.msk [vmem:[%s4061_s29 + $0xc4] sm:$0xf] %vm2051_vm3, %v3284_v12  ;;  %v2605_v30 = vsel %vm2164_vm4, %v2445_v10, 0.0 }
 0x1da   : > { %v2606_v20 = vadd.f32 %v2605_v30, %v2604_v23  ;;  %2157 = vst.msk [vmem:[%s4061_s29 + $0x1a4] sm:$0xf] %vm2051_vm3, %v3340_v3 }
 0x1dc   : > { %v1356_v62 = vpop.f32.mrb[100].mxu0  ;;  %v4557_v46 = vpop.f32.mrb[100].mxu1 }
 0x1dd   : > { %5057 = vst [vmem:[#allocation13_spill] sm:$0xff] %v4557_v46  ;;  %v3285_v54 = vpack.c.bf16 %v1356_v62, %v1356_v62  ;;  %v2264_v38 = vsel %vm2164_vm4, %v1356_v62, 0.0  ;;  %v2446_v6 = vmul.f32 %v1356_v62, %v1356_v62  ;;  %v1358_v40 = vpop.f32.mrb[101].mxu0  ;;  %v3341_v47 = vpack.c.bf16 %v4557_v46, %v4557_v46  ;;  %v1582_v60 = vpop.f32.mrb[101].mxu1 }
 0x1de   : > { %v2265_v12 = vadd.f32 %v2264_v38, %v2263_v34  ;;  %v1359_v48 = vpop.f32.mrb[102].mxu0  ;;  %v4562_v23 = vpop.f32.mrb[102].mxu1 }
 0x1df   : > { %5058 = vst [vmem:[#allocation14_spill] sm:$0xff] %v4562_v23  ;;  %2102 = vst.msk [vmem:[%s4061_s29 + $0xc8] sm:$0xf] %vm2051_vm3, %v3285_v54  ;;  %v2607_v10 = vsel %vm2164_vm4, %v2446_v6, 0.0  ;;  %v3286_v29 = vpack.c.bf16 %v1359_v48, %v1359_v48  ;;  %v2266_v3 = vsel %vm2164_vm4, %v1359_v48, 0.0  ;;  %v2447_v30 = vmul.f32 %v1359_v48, %v1359_v48  ;;  %v1361_v62 = vpop.f32.mrb[103].mxu0 }
 0x1e0   : > { %2158 = vst.msk [vmem:[%s4061_s29 + $0x1a8] sm:$0xf] %vm2051_vm3, %v3341_v47  ;;  %v1585_v40 = vpop.f32.mrb[103].mxu1  ;;  %v2608_v46 = vadd.f32 %v2607_v10, %v2606_v20  ;;  %v2267_v45 = vadd.f32 %v2266_v3, %v2265_v12  ;;  %v3342_v34 = vpack.c.bf16 %v4562_v23, %v4562_v23 }
 0x1e1   : > { %2103 = vst.msk [vmem:[%s4061_s29 + $0xcc] sm:$0xf] %vm2051_vm3, %v3286_v29  ;;  %v2609_v54 = vsel %vm2164_vm4, %v2447_v30, 0.0 }
 0x1e2   : > { %v2610_v38 = vadd.f32 %v2609_v54, %v2608_v46  ;;  %2159 = vst.msk [vmem:[%s4061_s29 + $0x1ac] sm:$0xf] %vm2051_vm3, %v3342_v34 }
 0x1e4   : > { %v1364_v6 = vpop.f32.mrb[104].mxu0  ;;  %v4577_v60 = vpop.f32.mrb[104].mxu1 }
 0x1e5   : > { %5059 = vst [vmem:[#allocation15_spill] sm:$0xff] %v4577_v60  ;;  %v3287_v48 = vpack.c.bf16 %v1364_v6, %v1364_v6  ;;  %v2268_v47 = vsel %vm2164_vm4, %v1364_v6, 0.0  ;;  %v2448_v20 = vmul.f32 %v1364_v6, %v1364_v6  ;;  %v1366_v12 = vpop.f32.mrb[105].mxu0  ;;  %v3343_v10 = vpack.c.bf16 %v4577_v60, %v4577_v60  ;;  %v1590_v3 = vpop.f32.mrb[105].mxu1 }
 0x1e6   : > { %v2269_v29 = vadd.f32 %v2268_v47, %v2267_v45  ;;  %v1367_v62 = vpop.f32.mrb[106].mxu0  ;;  %v4582_v46 = vpop.f32.mrb[106].mxu1 }
 0x1e7   : > { %5060 = vst [vmem:[#allocation16_spill] sm:$0xff] %v4582_v46  ;;  %2104 = vst.msk [vmem:[%s4061_s29 + $0xd0] sm:$0xf] %vm2051_vm3, %v3287_v48  ;;  %v2611_v30 = vsel %vm2164_vm4, %v2448_v20, 0.0  ;;  %v3288_v40 = vpack.c.bf16 %v1367_v62, %v1367_v62  ;;  %v2270_v34 = vsel %vm2164_vm4, %v1367_v62, 0.0  ;;  %v2449_v54 = vmul.f32 %v1367_v62, %v1367_v62  ;;  %v1369_v6 = vpop.f32.mrb[107].mxu0 }
 0x1e8   : > { %2160 = vst.msk [vmem:[%s4061_s29 + $0x1b0] sm:$0xf] %vm2051_vm3, %v3343_v10  ;;  %v1593_v12 = vpop.f32.mrb[107].mxu1  ;;  %v2612_v60 = vadd.f32 %v2611_v30, %v2610_v38  ;;  %v2271_v23 = vadd.f32 %v2270_v34, %v2269_v29  ;;  %v3344_v45 = vpack.c.bf16 %v4582_v46, %v4582_v46 }
 0x1e9   : > { %2105 = vst.msk [vmem:[%s4061_s29 + $0xd4] sm:$0xf] %vm2051_vm3, %v3288_v40  ;;  %v2613_v48 = vsel %vm2164_vm4, %v2449_v54, 0.0  ;;  %v2452_v40 = vmul.f32 %v4054_v28, %v4054_v28 }
 0x1ea   : > { %v2614_v47 = vadd.f32 %v2613_v48, %v2612_v60  ;;  %2161 = vst.msk [vmem:[%s4061_s29 + $0x1b4] sm:$0xf] %vm2051_vm3, %v3344_v45 }
 0x1ec   : > { %v1372_v20 = vpop.f32.mrb[108].mxu0  ;;  %v4597_v3 = vpop.f32.mrb[108].mxu1 }
 0x1ed   : > { %5061 = vst [vmem:[#allocation17_spill] sm:$0xff] %v4597_v3  ;;  %v3289_v62 = vpack.c.bf16 %v1372_v20, %v1372_v20  ;;  %v2272_v10 = vsel %vm2164_vm4, %v1372_v20, 0.0  ;;  %v2450_v38 = vmul.f32 %v1372_v20, %v1372_v20  ;;  %v1374_v29 = vpop.f32.mrb[109].mxu0  ;;  %v3345_v30 = vpack.c.bf16 %v4597_v3, %v4597_v3  ;;  %v1598_v34 = vpop.f32.mrb[109].mxu1 }
 0x1ee   : > { %v2273_v54 = vadd.f32 %v2272_v10, %v2271_v23  ;;  %v1375_v60 = vpop.f32.mrb[110].mxu0  ;;  %v4604_v6 = vpop.f32.mrb[110].mxu1 }
 0x1ef   : > { %2106 = vst.msk [vmem:[%s4061_s29 + $0xd8] sm:$0xf] %vm2051_vm3, %v3289_v62  ;;  %v2615_v12 = vsel %vm2164_vm4, %v2450_v38, 0.0  ;;  %v3290_v45 = vpack.c.bf16 %v1375_v60, %v1375_v60  ;;  %v2274_v48 = vsel %vm2164_vm4, %v1375_v60, 0.0  ;;  %v2451_v20 = vmul.f32 %v1375_v60, %v1375_v60  ;;  %v1377_v29 = vpop.f32.mrb[111].mxu0  ;;  %v1601_v34 = vpop.f32.mrb[111].mxu1 }
 0x1f0   : > { %2162 = vst.msk [vmem:[%s4061_s29 + $0x1b8] sm:$0xf] %vm2051_vm3, %v3345_v30  ;;  %v2616_v23 = vadd.f32 %v2615_v12, %v2614_v47  ;;  %v2275_v10 = vadd.f32 %v2274_v48, %v2273_v54  ;;  %v3346_v3 = vpack.c.bf16 %v4604_v6, %v4604_v6  ;;  %v2276_v62 = vsel %vm2164_vm4, %v4054_v28, 0.0 }
 0x1f1   : > { %v2453_v38 = vmul.f32 %v4059_v37, %v4059_v37  ;;  %2107 = vst.msk [vmem:[%s4061_s29 + $0xdc] sm:$0xf] %vm2051_vm3, %v3290_v45  ;;  %v2617_v46 = vsel %vm2164_vm4, %v2451_v20, 0.0  ;;  %v2619_v47 = vsel %vm2164_vm4, %v2452_v40, 0.0  ;;  %v2278_v28 = vsel %vm2164_vm4, %v4059_v37, 0.0 }
 0x1f2   : > { %v2277_v60 = vadd.f32 %v2276_v62, %v2275_v10  ;;  %v2618_v29 = vadd.f32 %v2617_v46, %v2616_v23  ;;  %2163 = vst.msk [vmem:[%s4061_s29 + $0x1bc] sm:$0xf] %vm2051_vm3, %v3346_v3  ;;  %v2454_v30 = vmul.f32 %v4077_v50, %v4077_v50  ;;  %v2280_v37 = vsel %vm2164_vm4, %v4077_v50, 0.0 }
 0x1f3   : > { %v2621_v3 = vsel %vm2164_vm4, %v2453_v38, 0.0  ;;  %v2455_v40 = vmul.f32 %v4082_v59, %v4082_v59 }
 0x1f4   : > { %v2279_v54 = vadd.f32 %v2278_v28, %v2277_v60  ;;  %v2620_v46 = vadd.f32 %v2619_v47, %v2618_v29 }
 0x1f5   : > { %3614 = shalt.err (!%p3611_p5)
}
 0x1f6   : > { %s3615_s13 = scalar_lea.hbm %s4635_s7, 7168  ;;  %s3619_s24 = scalar_lea.hbm %s5030_s2, 200704 }
 0x1f7   : > { %p3616_p6 = scmp.ne.s32.totalorder %s4635_s7, %s3615_s13  ;;  %p3620_p10 = scmp.lt.u32.totalorder %s4635_s7, %s5030_s2 }
 0x1f8   : > { %p3621_p11 = scmp.lt.u32.totalorder %s3619_s24, %s3615_s13  ;;  %p3623_p13 = scmp.lt.u32.totalorder %s3615_s13, %s4635_s7 }
 0x1f9   : > { %p3617_p7 = pnand %p3616_p6, %p3815_p4 }
 0x1fa   : > { %p3622_p12 = por %p3621_p11, %p3620_p10 }
 0x1fb   : > { %p3618_p9 = pneg %p3617_p7 }
 0x1fc   : > { %p3624_p0 = por %p3623_p13, %p3622_p12 }
 0x1fe   : > { %p3625_p1 = pnand %p3624_p0, %p3618_p9 }
 0x200   : > { %3628 = shalt.err (!%p3625_p1)
}
 0x201   : > { %s3744_s9 = smov 64   ;;  %s3745_s10 = smov 4   ;;  %v2281_v50 = vadd.f32 %v2280_v37, %v2279_v54  ;;  %v2622_v12 = vadd.f32 %v2621_v3, %v2620_v46  ;;  %v2623_v45 = vsel %vm2164_vm4, %v2454_v30, 0.0  ;;  %v2282_v48 = vsel %vm2164_vm4, %v4082_v59, 0.0 }
 0x202   : > { %3369 = dma.vmem_to_hbm [thread:$0]  (%p3815_p4), %s4630_s30, 7168, %s4635_s7, %s2739_s8, %s3744_s9, %s3744_s9, %s3745_s10   ;;  %v2456_v20 = vmul.f32 %v4097_v8, %v4097_v8  ;;  %v2625_v10 = vsel %vm2164_vm4, %v2455_v40, 0.0  ;;  %v2284_v62 = vsel %vm2164_vm4, %v4097_v8, 0.0  ;;  %v2457_v38 = vmul.f32 %v4102_v17, %v4102_v17 }
 0x203   : > { %v2283_v34 = vadd.f32 %v2282_v48, %v2281_v50  ;;  %v2624_v23 = vadd.f32 %v2623_v45, %v2622_v12  ;;  %v2286_v59 = vsel %vm2164_vm4, %v4102_v17, 0.0  ;;  %v2458_v28 = vmul.f32 %v4117_v31, %v4117_v31  ;;  %s4932_s30 = sand.u32 1, %s2931_s21   ;;  %s3230_s7 = sshll.u32 %s3731_s18, 4 }
 0x204   : > { %v2627_v47 = vsel %vm2164_vm4, %v2456_v20, 0.0  ;;  %v2629_v46 = vsel %vm2164_vm4, %v2457_v38, 0.0  ;;  %v2288_v8 = vsel %vm2164_vm4, %v4117_v31, 0.0  ;;  %v2459_v3 = vmul.f32 %v4122_v41, %v4122_v41  ;;  %s234_s8 = scalar_lea.vmem [#allocation4], %s4045_s14  ;;  %s240_s12 = scalar_lea.vmem [#allocation6], %s4045_s14 }
 0x205   : > { %v2285_v60 = vadd.f32 %v2284_v62, %v2283_v34  ;;  %v2626_v29 = vadd.f32 %v2625_v10, %v2624_v23  ;;  %v2631_v50 = vsel %vm2164_vm4, %v2458_v28, 0.0  ;;  %v2290_v17 = vsel %vm2164_vm4, %v4122_v41, 0.0  ;;  %s2778_s11 = sshll.u32 %s234_s8, 4  ;;  %s2792_s13 = sshll.u32 %s240_s12, 4  ;;  %s4944_s11 = int_to_ptr.vmem [resolvable:$true] %s2778_s11  ;;  %s4952_s13 = int_to_ptr.vmem [resolvable:$true] %s2792_s13 }
 0x206   : > { %v2460_v12 = vmul.f32 %v4137_v55, %v4137_v55  ;;  %v2633_v20 = vsel %vm2164_vm4, %v2459_v3, 0.0  ;;  %v2292_v31 = vsel %vm2164_vm4, %v4137_v55, 0.0  ;;  %v2461_v34 = vmul.f32 %v4142_v1, %v4142_v1  ;;  %s4942_s24 = scalar_lea.hbm %s5031_s3, %s3230_s7  ;;  %s4950_s5 = scalar_lea.hbm %s5032_s4, %s3230_s7 }
 0x207   : > { %v2287_v30 = vadd.f32 %v2286_v59, %v2285_v60  ;;  %v2628_v54 = vadd.f32 %v2627_v47, %v2626_v29  ;;  %v2294_v41 = vsel %vm2164_vm4, %v4142_v1, 0.0  ;;  %v2462_v38 = vmul.f32 %v4157_v15, %v4157_v15  ;;  %s2744_s6 = scalar_lea.sflag [#allocation5], %s4932_s30  ;;  %s3629_s9 = scalar_lea.vmem %s4944_s11, 16 }
 0x208   : > { %v2635_v62 = vsel %vm2164_vm4, %v2460_v12, 0.0  ;;  %v2637_v47 = vsel %vm2164_vm4, %v2461_v34, 0.0  ;;  %v2296_v55 = vsel %vm2164_vm4, %v4157_v15, 0.0  ;;  %v2463_v59 = vmul.f32 %v4162_v25, %v4162_v25  ;;  %p3630_p2 = scmp.ne.s32.totalorder %s4944_s11, %s3629_s9  ;;  %s3746_s10 = smov [#allocation4]  }
 0x209   : > { %v2289_v37 = vadd.f32 %v2288_v8, %v2287_v30  ;;  %v2630_v40 = vadd.f32 %v2629_v46, %v2628_v54  ;;  %v2639_v54 = vsel %vm2164_vm4, %v2462_v38, 0.0  ;;  %v2298_v1 = vsel %vm2164_vm4, %v4162_v25, 0.0  ;;  %s3633_s26 = sshll.u32 %s3746_s10, 4  ;;  %s3634_s26 = int_to_ptr.vmem [resolvable:$false] %s3633_s26 }
 0x20a   : > { %v2464_v46 = vmul.f32 %v4177_v42, %v4177_v42  ;;  %v2300_v15 = vsel %vm2164_vm4, %v4177_v42, 0.0  ;;  %v2302_v25 = vsel %vm2164_vm4, %v4182_v52, 0.0  ;;  %v2304_v42 = vsel %vm2164_vm4, %v4197_v4, 0.0  ;;  %p3631_p3 = pnand %p3630_p2, %p3815_p4  ;;  %s3635_s29 = scalar_lea.vmem %s3634_s26, 32 }
 0x20b   : > { %v2291_v45 = vadd.f32 %v2290_v17, %v2289_v37  ;;  %v2632_v48 = vadd.f32 %v2631_v50, %v2630_v40  ;;  %v2641_v37 = vsel %vm2164_vm4, %v2463_v59, 0.0  ;;  %v2465_v40 = vmul.f32 %v4182_v52, %v4182_v52  ;;  %p3636_p6 = scmp.lt.s32.totalorder %s4944_s11, %s3634_s26  ;;  %p3637_p7 = scmp.lt.s32.totalorder %s3635_s29, %s3629_s9 }
 0x20c   : > { %v2643_v12 = vsel %vm2164_vm4, %v2464_v46, 0.0  ;;  %v2467_v34 = vmul.f32 %v4202_v14, %v4202_v14  ;;  %v2306_v52 = vsel %vm2164_vm4, %v4202_v14, 0.0  ;;  %v2310_v14 = vsel %vm2164_vm4, %v4222_v44, 0.0  ;;  %p3632_p5 = pneg %p3631_p3 }
 0x20d   : > { %v2293_v23 = vadd.f32 %v2292_v31, %v2291_v45  ;;  %v2634_v10 = vadd.f32 %v2633_v20, %v2632_v48  ;;  %v2466_v45 = vmul.f32 %v4197_v4, %v4197_v4  ;;  %v2645_v31 = vsel %vm2164_vm4, %v2465_v40, 0.0  ;;  %p3638_p9 = por %p3637_p7, %p3636_p6 }
 0x20e   : > { %v2308_v4 = vsel %vm2164_vm4, %v4217_v32, 0.0  ;;  %v2472_v40 = vmul.f32 %v4257_v26, %v4257_v26  ;;  %vm2394_vm5 = vcmask 516096  }
 0x20f   : > { %v2295_v60 = vadd.f32 %v2294_v41, %v2293_v23  ;;  %v2636_v29 = vadd.f32 %v2635_v62, %v2634_v10  ;;  %v2647_v62 = vsel %vm2164_vm4, %v2466_v45, 0.0  ;;  %v2468_v41 = vmul.f32 %v4217_v32, %v4217_v32  ;;  %p3639_p10 = pnand %p3638_p9, %p3632_p5 }
 0x210   : > { %v2312_v32 = vsel %vm2164_vm4, %v4237_v61, 0.0 }
 0x211   : > { %v2297_v28 = vadd.f32 %v2296_v55, %v2295_v60  ;;  %v2638_v30 = vadd.f32 %v2637_v47, %v2636_v29  ;;  %v2649_v29 = vsel %vm2164_vm4, %v2467_v34, 0.0  ;;  %v2469_v47 = vmul.f32 %v4222_v44, %v4222_v44 }
 0x212   : > { %v2314_v44 = vsel %vm2164_vm4, %v4242_v9, 0.0 }
 0x213   : > { %v2299_v8 = vadd.f32 %v2298_v1, %v2297_v28  ;;  %v2640_v3 = vadd.f32 %v2639_v54, %v2638_v30  ;;  %v2651_v28 = vsel %vm2164_vm4, %v2468_v41, 0.0  ;;  %v2470_v30 = vmul.f32 %v4237_v61, %v4237_v61 }
 0x214   : > { %v2653_v46 = vsel %vm2164_vm4, %v2469_v47, 0.0  ;;  %v2316_v61 = vsel %vm2164_vm4, %v4257_v26, 0.0  ;;  %v2320_v26 = vsel %vm2164_vm4, %v4277_v58, 0.0  ;;  %v2477_v47 = vmul.f32 %v4302_v43, %v4302_v43 }
 0x215   : > { %v2301_v50 = vadd.f32 %v2300_v15, %v2299_v8  ;;  %v2642_v17 = vadd.f32 %v2641_v37, %v2640_v3  ;;  %v2471_v8 = vmul.f32 %v4242_v9, %v4242_v9  ;;  %v2655_v15 = vsel %vm2164_vm4, %v2470_v30, 0.0 }
 0x216   : > { %v2318_v9 = vsel %vm2164_vm4, %v4262_v39, 0.0 }
 0x217   : > { %v2303_v48 = vadd.f32 %v2302_v25, %v2301_v50  ;;  %v2644_v20 = vadd.f32 %v2643_v12, %v2642_v17  ;;  %v2657_v12 = vsel %vm2164_vm4, %v2471_v8, 0.0  ;;  %v2473_v25 = vmul.f32 %v4262_v39, %v4262_v39 }
 0x218   : > { %v2322_v39 = vsel %vm2164_vm4, %v4282_v7, 0.0 }
 0x219   : > { %v2646_v23 = vadd.f32 %v2645_v31, %v2644_v20  ;;  %v2305_v10 = vadd.f32 %v2304_v42, %v2303_v48  ;;  %v2659_v20 = vsel %vm2164_vm4, %v2472_v40, 0.0  ;;  %v2474_v31 = vmul.f32 %v4277_v58, %v4277_v58 }
 0x21a   : > { %v2324_v58 = vsel %vm2164_vm4, %v4297_v27, 0.0 }
 0x21b   : > { %v2307_v38 = vadd.f32 %v2306_v52, %v2305_v10  ;;  %v2648_v60 = vadd.f32 %v2647_v62, %v2646_v23  ;;  %v2661_v23 = vsel %vm2164_vm4, %v2473_v25, 0.0  ;;  %v2475_v10 = vmul.f32 %v4282_v7, %v4282_v7 }
 0x21c   : > { %v2663_v41 = vsel %vm2164_vm4, %v2474_v31, 0.0  ;;  %v2326_v7 = vsel %vm2164_vm4, %v4302_v43, 0.0  ;;  %v2330_v43 = vsel %vm2164_vm4, %v4322_v13, 0.0  ;;  %v2482_v25 = vmul.f32 %v4357_v11, %v4357_v11 }
 0x21d   : > { %v2309_v55 = vadd.f32 %v2308_v4, %v2307_v38  ;;  %v2650_v59 = vadd.f32 %v2649_v29, %v2648_v60  ;;  %v2476_v38 = vmul.f32 %v4297_v27, %v4297_v27  ;;  %v2665_v4 = vsel %vm2164_vm4, %v2475_v10, 0.0 }
 0x21e   : > { %v2328_v27 = vsel %vm2164_vm4, %v4317_v63, 0.0 }
 0x21f   : > { %v2311_v54 = vadd.f32 %v2310_v14, %v2309_v55  ;;  %v2652_v1 = vadd.f32 %v2651_v28, %v2650_v59  ;;  %v2667_v28 = vsel %vm2164_vm4, %v2476_v38, 0.0  ;;  %v2478_v14 = vmul.f32 %v4317_v63, %v4317_v63 }
 0x220   : > { %v2332_v63 = vsel %vm2164_vm4, %v4337_v35, 0.0 }
 0x221   : > { %v2313_v3 = vadd.f32 %v2312_v32, %v2311_v54  ;;  %v2654_v37 = vadd.f32 %v2653_v46, %v2652_v1  ;;  %v2669_v1 = vsel %vm2164_vm4, %v2477_v47, 0.0  ;;  %v2479_v46 = vmul.f32 %v4322_v13, %v4322_v13 }
 0x222   : > { %v2334_v13 = vsel %vm2164_vm4, %v4342_v51, 0.0  ;;  %v2487_v47 = vmul.f32 %v4402_v49, %v4402_v49 }
 0x223   : > { %v2315_v50 = vadd.f32 %v2314_v44, %v2313_v3  ;;  %v2656_v17 = vadd.f32 %v2655_v15, %v2654_v37  ;;  %v2671_v3 = vsel %vm2164_vm4, %v2478_v14, 0.0  ;;  %v2480_v37 = vmul.f32 %v4337_v35, %v4337_v35 }
 0x224   : > { %v2673_v40 = vsel %vm2164_vm4, %v2479_v46, 0.0  ;;  %v2336_v35 = vsel %vm2164_vm4, %v4357_v11, 0.0  ;;  %v2340_v11 = vsel %vm2164_vm4, %v4377_v53, 0.0 }
 0x225   : > { %v2317_v45 = vadd.f32 %v2316_v61, %v2315_v50  ;;  %v2658_v48 = vadd.f32 %v2657_v12, %v2656_v17  ;;  %v2481_v50 = vmul.f32 %v4342_v51, %v4342_v51  ;;  %v2675_v61 = vsel %vm2164_vm4, %v2480_v37, 0.0 }
 0x226   : > { %v2338_v51 = vsel %vm2164_vm4, %v4362_v24, 0.0 }
 0x227   : > { %v2319_v42 = vadd.f32 %v2318_v9, %v2317_v45  ;;  %v2660_v34 = vadd.f32 %v2659_v20, %v2658_v48  ;;  %v2677_v20 = vsel %vm2164_vm4, %v2481_v50, 0.0  ;;  %v2483_v9 = vmul.f32 %v4362_v24, %v4362_v24 }
 0x228   : > { %v2342_v24 = vsel %vm2164_vm4, %v4382_v5, 0.0  ;;  %v2492_v50 = vmul.f32 %v4457_v57, %v4457_v57 }
 0x229   : > { %v2321_v62 = vadd.f32 %v2320_v26, %v2319_v42  ;;  %v2662_v52 = vadd.f32 %v2661_v23, %v2660_v34  ;;  %v2679_v34 = vsel %vm2164_vm4, %v2482_v25, 0.0  ;;  %v2484_v23 = vmul.f32 %v4377_v53, %v4377_v53 }
 0x22a   : > { %v2344_v53 = vsel %vm2164_vm4, %v4397_v33, 0.0 }
 0x22b   : > { %v2323_v60 = vadd.f32 %v2322_v39, %v2321_v62  ;;  %v2664_v29 = vadd.f32 %v2663_v41, %v2662_v52  ;;  %v2681_v62 = vsel %vm2164_vm4, %v2483_v9, 0.0  ;;  %v2485_v52 = vmul.f32 %v4382_v5, %v4382_v5 }
 0x22c   : > { %v2683_v38 = vsel %vm2164_vm4, %v2484_v23, 0.0  ;;  %v2346_v5 = vsel %vm2164_vm4, %v4402_v49, 0.0  ;;  %v2350_v49 = vsel %vm2164_vm4, %v4422_v36, 0.0 }
 0x22d   : > { %v2325_v55 = vadd.f32 %v2324_v58, %v2323_v60  ;;  %v2666_v59 = vadd.f32 %v2665_v4, %v2664_v29  ;;  %v2486_v60 = vmul.f32 %v4397_v33, %v4397_v33  ;;  %v2685_v58 = vsel %vm2164_vm4, %v2485_v52, 0.0 }
 0x22e   : > { %v2348_v33 = vsel %vm2164_vm4, %v4417_v18, 0.0  ;;  %v2497_v52 = vmul.f32 %v4502_v21, %v4502_v21 }
 0x22f   : > { %v2327_v30 = vadd.f32 %v2326_v7, %v2325_v55  ;;  %v2668_v54 = vadd.f32 %v2667_v28, %v2666_v59  ;;  %v2687_v28 = vsel %vm2164_vm4, %v2486_v60, 0.0  ;;  %v2488_v7 = vmul.f32 %v4417_v18, %v4417_v18 }
 0x230   : > { %v2352_v18 = vsel %vm2164_vm4, %v4437_v2, 0.0 }
 0x231   : > { %v2329_v32 = vadd.f32 %v2328_v27, %v2327_v30  ;;  %v2670_v8 = vadd.f32 %v2669_v1, %v2668_v54  ;;  %v2689_v54 = vsel %vm2164_vm4, %v2487_v47, 0.0  ;;  %v2489_v1 = vmul.f32 %v4422_v36, %v4422_v36 }
 0x232   : > { %v2354_v36 = vsel %vm2164_vm4, %v4442_v22, 0.0 }
 0x233   : > { %v2331_v15 = vadd.f32 %v2330_v43, %v2329_v32  ;;  %v2672_v44 = vadd.f32 %v2671_v3, %v2670_v8  ;;  %v2691_v32 = vsel %vm2164_vm4, %v2488_v7, 0.0  ;;  %v2490_v8 = vmul.f32 %v4437_v2, %v4437_v2 }
 0x234   : > { %v2693_v37 = vsel %vm2164_vm4, %v2489_v1, 0.0  ;;  %v2356_v2 = vsel %vm2164_vm4, %v4457_v57, 0.0  ;;  %v2360_v57 = vsel %vm2164_vm4, %v4477_v56, 0.0  ;;  %v5065_v1 = vld [vmem:[#allocation12_spill] sm:$0xff] }
 0x235   : > { %v2333_v17 = vadd.f32 %v2332_v63, %v2331_v15  ;;  %v2674_v12 = vadd.f32 %v2673_v40, %v2672_v44  ;;  %v2491_v15 = vmul.f32 %v4442_v22, %v4442_v22  ;;  %v2695_v63 = vsel %vm2164_vm4, %v2490_v8, 0.0 }
 0x236   : > { %v2358_v22 = vsel %vm2164_vm4, %v4462_v19, 0.0  ;;  %v2374_v8 = vsel %vm2164_vm4, %v5065_v1, 0.0 }
 0x237   : > { %v2676_v45 = vadd.f32 %v2675_v61, %v2674_v12  ;;  %v2335_v48 = vadd.f32 %v2334_v13, %v2333_v17  ;;  %v2697_v61 = vsel %vm2164_vm4, %v2491_v15, 0.0  ;;  %v2493_v13 = vmul.f32 %v4462_v19, %v4462_v19 }
 0x238   : > { %v2362_v19 = vsel %vm2164_vm4, %v4482_v16, 0.0 }
 0x239   : > { %v2678_v31 = vadd.f32 %v2677_v20, %v2676_v45  ;;  %v2337_v42 = vadd.f32 %v2336_v35, %v2335_v48  ;;  %v2699_v48 = vsel %vm2164_vm4, %v2492_v50, 0.0  ;;  %v2494_v20 = vmul.f32 %v4477_v56, %v4477_v56 }
 0x23a   : > { %v2364_v56 = vsel %vm2164_vm4, %v4497_v0, 0.0 }
 0x23b   : > { %v2680_v26 = vadd.f32 %v2679_v34, %v2678_v31  ;;  %v2339_v10 = vadd.f32 %v2338_v51, %v2337_v42  ;;  %v2701_v31 = vsel %vm2164_vm4, %v2493_v13, 0.0  ;;  %v2495_v42 = vmul.f32 %v4482_v16, %v4482_v16 }
 0x23c   : > { %v2703_v23 = vsel %vm2164_vm4, %v2494_v20, 0.0  ;;  %v2366_v16 = vsel %vm2164_vm4, %v4502_v21, 0.0 }
 0x23d   : > { %v2682_v41 = vadd.f32 %v2681_v62, %v2680_v26  ;;  %v2341_v39 = vadd.f32 %v2340_v11, %v2339_v10  ;;  %v2496_v26 = vmul.f32 %v4497_v0, %v4497_v0  ;;  %v2705_v11 = vsel %vm2164_vm4, %v2495_v42, 0.0 }
 0x23f   : > { %v2684_v29 = vadd.f32 %v2683_v38, %v2682_v41  ;;  %v2343_v4 = vadd.f32 %v2342_v24, %v2341_v39  ;;  %v2707_v38 = vsel %vm2164_vm4, %v2496_v26, 0.0  ;;  %v5062_v24 = vld [vmem:[#allocation9_spill] sm:$0xff] }
 0x240   : > { %v2498_v60 = vmul.f32 %v5062_v24, %v5062_v24  ;;  %v2368_v0 = vsel %vm2164_vm4, %v5062_v24, 0.0 }
 0x241   : > { %v2686_v55 = vadd.f32 %v2685_v58, %v2684_v29  ;;  %v2345_v59 = vadd.f32 %v2344_v53, %v2343_v4  ;;  %v2709_v58 = vsel %vm2164_vm4, %v2497_v52, 0.0  ;;  %v5063_v53 = vld [vmem:[#allocation10_spill] sm:$0xff]  ;;  %v2386_v52 = vsel %vm2164_vm4, %v4604_v6, 0.0 }
 0x242   : > { %v2499_v47 = vmul.f32 %v5063_v53, %v5063_v53  ;;  %v2370_v21 = vsel %vm2164_vm4, %v5063_v53, 0.0 }
 0x243   : > { %v2688_v14 = vadd.f32 %v2687_v28, %v2686_v55  ;;  %v2347_v30 = vadd.f32 %v2346_v5, %v2345_v59  ;;  %v2711_v28 = vsel %vm2164_vm4, %v2498_v60, 0.0  ;;  %v5064_v5 = vld [vmem:[#allocation11_spill] sm:$0xff] }
 0x244   : > { %v2500_v7 = vmul.f32 %v5064_v5, %v5064_v5 }
 0x245   : > { %v2690_v27 = vadd.f32 %v2689_v54, %v2688_v14  ;;  %v2349_v46 = vadd.f32 %v2348_v33, %v2347_v30  ;;  %v2713_v54 = vsel %vm2164_vm4, %v2499_v47, 0.0  ;;  %v2372_v33 = vsel %vm2164_vm4, %v5064_v5, 0.0 }
 0x247   : > { %v2692_v3 = vadd.f32 %v2691_v32, %v2690_v27  ;;  %v2351_v43 = vadd.f32 %v2350_v49, %v2349_v46  ;;  %v2501_v27 = vmul.f32 %v5065_v1, %v5065_v1  ;;  %v2715_v49 = vsel %vm2164_vm4, %v2500_v7, 0.0 }
 0x249   : > { %v2694_v44 = vadd.f32 %v2693_v37, %v2692_v3  ;;  %v2353_v40 = vadd.f32 %v2352_v18, %v2351_v43  ;;  %v5066_v3 = vld [vmem:[#allocation13_spill] sm:$0xff]  ;;  %v2717_v15 = vsel %vm2164_vm4, %v2501_v27, 0.0 }
 0x24a   : > { %v2502_v43 = vmul.f32 %v5066_v3, %v5066_v3 }
 0x24b   : > { %v2696_v17 = vadd.f32 %v2695_v63, %v2694_v44  ;;  %v2355_v12 = vadd.f32 %v2354_v36, %v2353_v40  ;;  %v2376_v44 = vsel %vm2164_vm4, %v5066_v3, 0.0  ;;  %v5067_v40 = vld [vmem:[#allocation14_spill] sm:$0xff] }
 0x24c   : > { %v2503_v63 = vmul.f32 %v5067_v40, %v5067_v40 }
 0x24d   : > { %v2698_v25 = vadd.f32 %v2697_v61, %v2696_v17  ;;  %v2357_v45 = vadd.f32 %v2356_v2, %v2355_v12  ;;  %v2719_v17 = vsel %vm2164_vm4, %v2502_v43, 0.0  ;;  %v2378_v12 = vsel %vm2164_vm4, %v5067_v40, 0.0  ;;  %v5068_v61 = vld [vmem:[#allocation15_spill] sm:$0xff] }
 0x24e   : > { %v2504_v2 = vmul.f32 %v5068_v61, %v5068_v61 }
 0x24f   : > { %v2700_v35 = vadd.f32 %v2699_v48, %v2698_v25  ;;  %v2359_v9 = vadd.f32 %v2358_v22, %v2357_v45  ;;  %v2721_v45 = vsel %vm2164_vm4, %v2503_v63, 0.0  ;;  %v2380_v48 = vsel %vm2164_vm4, %v5068_v61, 0.0  ;;  %v5069_v22 = vld [vmem:[#allocation16_spill] sm:$0xff] }
 0x250   : > { %v2505_v20 = vmul.f32 %v5069_v22, %v5069_v22  ;;  %v2723_v42 = vsel %vm2164_vm4, %v2504_v2, 0.0 }
 0x251   : > { %v2702_v34 = vadd.f32 %v2701_v31, %v2700_v35  ;;  %v2361_v51 = vadd.f32 %v2360_v57, %v2359_v9  ;;  %v5070_v35 = vld [vmem:[#allocation17_spill] sm:$0xff] }
 0x252   : > { %v2506_v9 = vmul.f32 %v5070_v35, %v5070_v35  ;;  %v2725_v26 = vsel %vm2164_vm4, %v2505_v20, 0.0 }
 0x253   : > { %v2704_v10 = vadd.f32 %v2703_v23, %v2702_v34  ;;  %v2363_v62 = vadd.f32 %v2362_v19, %v2361_v51  ;;  %v2382_v34 = vsel %vm2164_vm4, %v5069_v22, 0.0  ;;  %v2384_v51 = vsel %vm2164_vm4, %v5070_v35, 0.0 }
 0x255   : > { %v2706_v41 = vadd.f32 %v2705_v11, %v2704_v10  ;;  %v2365_v39 = vadd.f32 %v2364_v56, %v2363_v62  ;;  %v2727_v10 = vsel %vm2164_vm4, %v2506_v9, 0.0  ;;  %v2507_v62 = vmul.f32 %v4604_v6, %v4604_v6 }
 0x257   : > { %v2708_v29 = vadd.f32 %v2707_v38, %v2706_v41  ;;  %v2367_v4 = vadd.f32 %v2366_v16, %v2365_v39  ;;  %v2729_v38 = vsel %vm2164_vm4, %v2507_v62, 0.0 }
 0x259   : > { %v2710_v55 = vadd.f32 %v2709_v58, %v2708_v29  ;;  %v2369_v59 = vadd.f32 %v2368_v0, %v2367_v4 }
 0x25b   : > { %v2712_v14 = vadd.f32 %v2711_v28, %v2710_v55  ;;  %v2371_v30 = vadd.f32 %v2370_v21, %v2369_v59 }
 0x25d   : > { %v2714_v46 = vadd.f32 %v2713_v54, %v2712_v14  ;;  %v2373_v32 = vadd.f32 %v2372_v33, %v2371_v30 }
 0x25f   : > { %v2716_v37 = vadd.f32 %v2715_v49, %v2714_v46  ;;  %v2375_v18 = vadd.f32 %v2374_v8, %v2373_v32 }
 0x261   : > { %v2718_v36 = vadd.f32 %v2717_v15, %v2716_v37  ;;  %v2377_v50 = vadd.f32 %v2376_v44, %v2375_v18 }
 0x263   : > { %v2720_v13 = vadd.f32 %v2719_v17, %v2718_v36  ;;  %v2379_v25 = vadd.f32 %v2378_v12, %v2377_v50 }
 0x265   : > { %v2722_v31 = vadd.f32 %v2721_v45, %v2720_v13  ;;  %v2381_v57 = vadd.f32 %v2380_v48, %v2379_v25 }
 0x267   : > { %v2724_v23 = vadd.f32 %v2723_v42, %v2722_v31  ;;  %v2383_v19 = vadd.f32 %v2382_v34, %v2381_v57 }
 0x269   : > { %v2726_v11 = vadd.f32 %v2725_v26, %v2724_v23  ;;  %v2385_v56 = vadd.f32 %v2384_v51, %v2383_v19 }
 0x26b   : > { %v2728_v41 = vadd.f32 %v2727_v10, %v2726_v11  ;;  %v2387_v39 = vadd.f32 %v2386_v52, %v2385_v56 }
 0x26d   : > { %v2388_v16 = vrot.slane %v2387_v39, 4  ;;  %v2730_v24 = vadd.f32 %v2729_v38, %v2728_v41 }
 0x26f   : > { %v2389_v60 = vadd.f32 %v2388_v16, %v2387_v39  ;;  %v2731_v29 = vrot.slane %v2730_v24, 4 }
 0x271   : > { %v2390_v4 = vrot.slane %v2389_v60, 2  ;;  %v2732_v58 = vadd.f32 %v2731_v29, %v2730_v24 }
 0x273   : > { %v2391_v0 = vadd.f32 %v2390_v4, %v2389_v60  ;;  %v2733_v53 = vrot.slane %v2732_v58, 2 }
 0x275   : > { %v2734_v6 = vadd.f32 %v2733_v53, %v2732_v58  ;;  %v2392_v47 = vrot.slane %v2391_v0, 1 }
 0x277   : > { %v2393_v55 = vadd.f32 %v2392_v47, %v2391_v0  ;;  %v2735_v59 = vrot.slane %v2734_v6, 1 }
 0x279   : > { %2395 = vst.msk [vmem:[%s234_s8] sm:$0x1] %vm2394_vm5, %v2393_v55  ;;  %v2736_v28 = vadd.f32 %v2735_v59, %v2734_v6 }
 0x27a   : > { %3642 = shalt.err (!%p3639_p10)
}
 0x27b   : > { %s3643_s7 = scalar_lea.hbm %s4942_s24, 16  ;;  %s3647_s21 = scalar_lea.hbm %s5031_s3, 448 }
 0x27c   : > { %p3644_p11 = scmp.ne.s32.totalorder %s4942_s24, %s3643_s7  ;;  %p3648_p0 = scmp.lt.u32.totalorder %s4942_s24, %s5031_s3 }
 0x27d   : > { %p3649_p1 = scmp.lt.u32.totalorder %s3647_s21, %s3643_s7  ;;  %p3651_p3 = scmp.lt.u32.totalorder %s3643_s7, %s4942_s24 }
 0x27e   : > { %p3645_p12 = pnand %p3644_p11, %p3815_p4 }
 0x27f   : > { %p3650_p2 = por %p3649_p1, %p3648_p0 }
 0x280   : > { %p3646_p13 = pneg %p3645_p12 }
 0x281   : > { %p3652_p5 = por %p3651_p3, %p3650_p2 }
 0x283   : > { %p3653_p6 = pnand %p3652_p5, %p3646_p13 }
 0x285   : > { %3656 = shalt.err (!%p3653_p6)
}
 0x286   : > { %3370 = dma.vmem_to_hbm [thread:$0]  (%p3815_p4), %s4944_s11, 16, %s4942_s24, %s2744_s6   ;;  %2737 = vst.msk [vmem:[%s240_s12] sm:$0x1] %vm2394_vm5, %v2736_v28 }
 0x287   : > { %s3657_s9 = scalar_lea.vmem %s4952_s13, 16  ;;  %s3747_s29 = smov [#allocation6]  }
 0x288   : > { %p3658_p7 = scmp.ne.s32.totalorder %s4952_s13, %s3657_s9  ;;  %s3661_s7 = sshll.u32 %s3747_s29, 4  ;;  %s3662_s7 = int_to_ptr.vmem [resolvable:$false] %s3661_s7 }
 0x289   : > { %s3663_s8 = scalar_lea.vmem %s3662_s7, 32  ;;  %p3664_p11 = scmp.lt.s32.totalorder %s4952_s13, %s3662_s7 }
 0x28a   : > { %p3659_p9 = pnand %p3658_p7, %p3815_p4  ;;  %p3665_p12 = scmp.lt.s32.totalorder %s3663_s8, %s3657_s9 }
 0x28c   : > { %p3660_p10 = pneg %p3659_p9  ;;  %p3666_p13 = por %p3665_p12, %p3664_p11 }
 0x28e   : > { %p3667_p0 = pnand %p3666_p13, %p3660_p10 }
 0x290   : > { %3670 = shalt.err (!%p3667_p0)
}
 0x291   : > { %s3671_s14 = scalar_lea.hbm %s4950_s5, 16  ;;  %s3675_s24 = scalar_lea.hbm %s5032_s4, 448 }
 0x292   : > { %p3672_p1 = scmp.ne.s32.totalorder %s4950_s5, %s3671_s14  ;;  %p3676_p5 = scmp.lt.u32.totalorder %s4950_s5, %s5032_s4 }
 0x293   : > { %p3677_p6 = scmp.lt.u32.totalorder %s3675_s24, %s3671_s14  ;;  %p3679_p9 = scmp.lt.u32.totalorder %s3671_s14, %s4950_s5 }
 0x294   : > { %p3673_p2 = pnand %p3672_p1, %p3815_p4 }
 0x295   : > { %p3678_p7 = por %p3677_p6, %p3676_p5 }
 0x296   : > { %p3674_p3 = pneg %p3673_p2 }
 0x297   : > { %p3680_p10 = por %p3679_p9, %p3678_p7 }
 0x299   : > { %p3681_p11 = pnand %p3680_p10, %p3674_p3 }
 0x29b   : > { %3684 = shalt.err (!%p3681_p11)
}
 0x29c   : > { %3371 = dma.vmem_to_hbm [thread:$0]  (%p3815_p4), %s4952_s13, 16, %s4950_s5, %s2744_s6  }
 0x29d PF: > { %p3385_p12 = scmp.ge.s32.totalorder %s3739_s20, 2  ;;  %s2804_s10 = sand.u32 1, %s3719_s15  }
 0x29e   : > { %s2805_s26 = scalar_lea.sflag [#allocation3], %s2804_s10 }
 0x29f   : > { %p3376_p13 = pnand %p3385_p12, %p3824_p8 }
 0x2a1   : > { %3710 = dma.done.wait (!%p3376_p13), %s2805_s26, 7168  }
 0x2a2   : > { %3712 = vsyncadd (!%p3376_p13), %s2805_s26, 4294960128  ;;  %s2813_s9 = sand.u32 1, %s2932_s22  }
 0x2a3   : > { %s2814_s25 = scalar_lea.sflag [#allocation5], %s2813_s9 }
 0x2a4   : > { %3714 = dma.done.wait (!%p3376_p13), %s2814_s25, 32  }
 0x2a5   : > { %3716 = vsyncadd (!%p3376_p13), %s2814_s25, 4294967264  ;;  %s21_s20 = sadd.s32 1, %s3739_s20   ;;  %s5071_s15 = smov %s3723_s16 }
 0x2a6   : > { %p18_p4 = scmp.ge.s32.totalorder %s21_s20, 30   ;;  %s5072_s16 = smov %s3727_s17 }
 0x2a7   : > { %s5073_s17 = smov %s3830_s28  ;;  %s5074_s18 = smov %s3735_s19 }
 0x2a8   : > { %s5075_s19 = smov %s5077_s23  ;;  %20 = sbr.rel (!%p18_p4) target bundleno = 6 (0x6), region = 98 }
 0x2af   :  { %2826 = vsyncpa [#allocation3], 1 }
 0x2b0   :  { %2828 = vsyncpa [#allocation3 + $0x1], 1 }
 0x2b1   :  { %2829 = vsyncpa [#allocation5], 1 }
 0x2b2   :  { %2831 = vsyncpa [#allocation5 + $0x1], 1 }

</bundles_post_ra>
